<compile_context>
chip_gen: v6e
topology: v6e:2x2x1
jax: 0.10.0
libtpu: 0.0.40
codegen_flags: <defaults>
</compile_context>

<pallas_src>
import math

import jax
import jax.numpy as jnp
from jax.experimental import pallas as pl
from jax.experimental.pallas import tpu as pltpu

NUM_FREQS = 4          # FourierEmbedding(4) -> 1 + 2*4 = 9 channels
EMB_CH = 1 + 2 * NUM_FREQS
LEAKY_SLOPE = 0.01     # nn.LeakyReLU default


def _leaky_relu(x):
    return jnp.where(x > 0, x, LEAKY_SLOPE * x)


def _ib_kernel(x_ref, noise_ref,
               rf_ref, wx_ref, wsin_ref, wcos_ref, benc_ref,
               whid_ref, bhid_ref,
               wmu_ref, bmu_ref, wlv_ref, blv_ref, ssum_ref,
               samples_ref, dkl_ref):
    # x_ref: [TB, G], noise_ref / samples_ref: [TB, G*E], dkl_ref: [TB, G]
    x = x_ref[...]

    # Fourier embedding, expressed without lane-axis concatenation:
    #   xs[b, g*NF + k] = x[b, g] * 2**k   (block-diagonal frequency expansion)
    xs = jnp.dot(x, rf_ref[...], preferred_element_type=jnp.float32)   # [TB, G*NF]
    sin_f = jnp.sin(xs)
    cos_f = jnp.cos(xs)

    # encode: MultiGroupLinear(9 -> C) as three block-diagonal matmuls
    h = jnp.dot(x, wx_ref[...], preferred_element_type=jnp.float32)          # [TB, G*C]
    h = h + jnp.dot(sin_f, wsin_ref[...], preferred_element_type=jnp.float32)
    h = h + jnp.dot(cos_f, wcos_ref[...], preferred_element_type=jnp.float32)
    h = h + benc_ref[...]                                                     # [1, G*C]

    # backbone MultiGroupMLP(num_layers=1): LeakyReLU -> Linear(C->C) -> LeakyReLU
    h = _leaky_relu(h)
    h = jnp.dot(h, whid_ref[...], preferred_element_type=jnp.float32) + bhid_ref[...]
    h = _leaky_relu(h)

    # decode_mu / decode_log_var: MultiGroupLinear(C -> E), block-diagonal
    mu = jnp.dot(h, wmu_ref[...], preferred_element_type=jnp.float32) + bmu_ref[...]
    lv = jnp.dot(h, wlv_ref[...], preferred_element_type=jnp.float32) + blv_ref[...]
    lv = jnp.maximum(lv, -6.0)                      # torch.clamp(min=-6.0)

    std = jnp.exp(0.5 * lv)                         # single exp per element
    var = std * std                                 # == exp(lv), no second exp

    # reparameterized sample: mu + std * eps  (already in [B, G*E] flatten order)
    samples_ref[...] = mu + std * noise_ref[...]

    # KL: 0.5 * sum_e(exp(lv) + mu^2 - 1 - lv) as a block-diag summation matmul
    term = var + mu * mu - 1.0 - lv                 # [TB, G*E]
    dkl_ref[...] = jnp.dot(term, ssum_ref[...], preferred_element_type=jnp.float32)


def _block_diag(w):
    """w: [G, I, O] -> block-diagonal [G*I, G*O]."""
    G, I, O = w.shape
    eye = jnp.eye(G, dtype=w.dtype)
    return jnp.einsum('gio,gh->giho', w, eye).reshape(G * I, G * O)


def prepare_block_diag_params(params):
    """One-time wrapper-side restructuring into lane-dense block-diagonal weights."""
    w_enc, b_enc, w_hid, b_hid, w_mu, b_mu, w_lv, b_lv = params
    G, _, C = w_enc.shape
    E = w_mu.shape[-1]
    freqs = 2.0 ** jnp.arange(NUM_FREQS, dtype=jnp.float32)

    rf = _block_diag(jnp.broadcast_to(freqs, (G, 1, NUM_FREQS)))          # [G, G*NF]
    wx = _block_diag(w_enc[:, 0:1, :])                                    # [G, G*C]
    wsin = _block_diag(w_enc[:, 1:1 + NUM_FREQS, :])                      # [G*NF, G*C]
    wcos = _block_diag(w_enc[:, 1 + NUM_FREQS:1 + 2 * NUM_FREQS, :])      # [G*NF, G*C]
    whid = _block_diag(w_hid)                                             # [G*C, G*C]
    wmu = _block_diag(w_mu)                                               # [G*C, G*E]
    wlv = _block_diag(w_lv)                                               # [G*C, G*E]
    ssum = _block_diag(jnp.full((G, E, 1), 0.5, jnp.float32))             # [G*E, G]

    benc = b_enc.reshape(1, G * C)
    bhid = b_hid.reshape(1, G * C)
    bmu = b_mu.reshape(1, G * E)
    blv = b_lv.reshape(1, G * E)
    return (rf, wx, wsin, wcos, benc, whid, bhid, wmu, bmu, wlv, blv, ssum)


def _round_up(a, m):
    return ((a + m - 1) // m) * m


def information_bottleneck_forward(x_bg, noise_bge, params, *, batch_tile=256):
    """x_bg: [B, G] f32, noise_bge: [B, G, E] f32 standard normal.

    Returns (samples [B, G*E], d_kl [B, G]) matching the PyTorch module.
    """
    w_enc = params[0]
    w_mu = params[4]
    B, G = x_bg.shape
    C = w_enc.shape[-1]
    E = w_mu.shape[-1]
    GC, GE = G * C, G * E

    prepped = prepare_block_diag_params(params)

    # PyTorch flatten(start_dim=-2) order: group-major, embedding-minor.
    noise = noise_bge.reshape(B, GE)

    # Batch tiling: tile on the sublane axis; must be a multiple of 8 or the full batch.
    if B <= batch_tile:
        tb, Bp = B, B
    else:
        tb = max(8, (min(batch_tile, B) // 8) * 8)
        Bp = _round_up(B, tb)
    if Bp != B:
        x_bg = jnp.pad(x_bg, ((0, Bp - B), (0, 0)))
        noise = jnp.pad(noise, ((0, Bp - B), (0, 0)))

    grid = (Bp // tb,)

    def batch_spec(width):
        return pl.BlockSpec((tb, width), lambda i: (i, 0))

    def const_spec(shape):
        # Constant block index -> weight stays VMEM-resident across grid steps.
        return pl.BlockSpec(shape, lambda i: (0, 0))

    in_arrays = (x_bg, noise) + prepped
    in_specs = [batch_spec(G), batch_spec(GE)] + [const_spec(p.shape) for p in prepped]

    samples, d_kl = pl.pallas_call(
        _ib_kernel,
        out_shape=(jax.ShapeDtypeStruct((Bp, GE), jnp.float32),
                   jax.ShapeDtypeStruct((Bp, G), jnp.float32)),
        grid=grid,
        in_specs=in_specs,
        out_specs=(batch_spec(GE), batch_spec(G)),
        compiler_params=pltpu.CompilerParams(
            dimension_semantics=("parallel",)),
    )(*in_arrays)

    return samples[:B], d_kl[:B]


def init_params(key, num_groups, backbone_channels, embedding_channels):
    """Deterministic synthetic parameters with the module's shapes/init ranges."""
    G, C, E = num_groups, backbone_channels, embedding_channels
    gain = math.sqrt(2.0 / (1.0 + LEAKY_SLOPE ** 2))      # calculate_gain('leaky_relu')
    ks = jax.random.split(key, 8)

    def xavier(k, shape, fan_in, fan_out):
        bound = gain * math.sqrt(6.0 / (fan_in + fan_out))
        return jax.random.uniform(k, shape, jnp.float32, -bound, bound)

    def small(k, shape, bound=0.05):
        return jax.random.uniform(k, shape, jnp.float32, -bound, bound)

    w_enc = xavier(ks[0], (G, EMB_CH, C), EMB_CH, C)
    b_enc = small(ks[1], (G, C))
    # backbone MultiGroupMLP re-inits to uniform(-0.05, 0.05)
    w_hid = small(ks[2], (G, C, C))
    b_hid = small(ks[3], (G, C))
    w_mu = xavier(ks[4], (G, C, E), C, E)
    b_mu = small(ks[5], (G, E))
    w_lv = xavier(ks[6], (G, C, E), C, E)
    b_lv = small(ks[7], (G, E))
    return (w_enc, b_enc, w_hid, b_hid, w_mu, b_mu, w_lv, b_lv)


def reference_forward(x_bg, noise_bge, params):
    """Pure-JAX reference mirroring the PyTorch module (for correctness check)."""
    (w_enc, b_enc, w_hid, b_hid, w_mu, b_mu, w_lv, b_lv) = params
    freqs = 2.0 ** jnp.arange(NUM_FREQS, dtype=jnp.float32)
    xs = x_bg[..., None]                                  # [B, G, 1]
    scaled = xs * freqs
    emb = jnp.concatenate([xs, jnp.sin(scaled), jnp.cos(scaled)], axis=-1)

    def mgl(x, w, b):  # x: [B, G, I], w: [G, I, O], b: [G, O]
        return jnp.einsum('bgi,gio->bgo', x, w,
                          precision=jax.lax.Precision.HIGHEST) + b[None]

    h = mgl(emb, w_enc, b_enc)
    h = _leaky_relu(h)
    h = mgl(h, w_hid, b_hid)
    h = _leaky_relu(h)
    mu = mgl(h, w_mu, b_mu)
    lv = jnp.maximum(mgl(h, w_lv, b_lv), -6.0)
    d_kl = 0.5 * jnp.sum(jnp.exp(lv) + mu ** 2 - 1.0 - lv, axis=-1)
    samples = mu + jnp.exp(0.5 * lv) * noise_bge
    B, G, E = samples.shape
    return samples.reshape(B, G * E), d_kl


if __name__ == "__main__":
    # batch, num_groups, backbone channels, embedding_channels  (G*C = 128 lanes)
    B, G, C, E = 128, 4, 32, 8

    key = jax.random.PRNGKey(0)
    k_x, k_n, k_p = jax.random.split(key, 3)
    x = jax.random.uniform(k_x, (B, G), jnp.float32, -1.0, 1.0)
    noise = jax.random.normal(k_n, (B, G, E), jnp.float32)
    params = init_params(k_p, G, C, E)

    # batch_tile=64 -> grid=(2,), exercises the pipelined/parallel batch axis.
    samples, d_kl = information_bottleneck_forward(x, noise, params, batch_tile=64)
    samples = jax.block_until_ready(samples)
    d_kl = jax.block_until_ready(d_kl)

    ref_samples, ref_dkl = reference_forward(x, noise, params)
    assert samples.shape == (B, G * E) and d_kl.shape == (B, G)
    assert jnp.allclose(samples, ref_samples, atol=1e-3, rtol=1e-3), \
        float(jnp.max(jnp.abs(samples - ref_samples)))
    assert jnp.allclose(d_kl, ref_dkl, atol=1e-3, rtol=1e-3), \
        float(jnp.max(jnp.abs(d_kl - ref_dkl)))

    print("KERNEL_OK")
</pallas_src>

<mosaic_0001>
module attributes {stable_mosaic.version = 11 : i64} {
  func.func @_ib_kernel(%arg0: i32, %arg1: memref<64x4xf32, #tpu.memory_space<vmem>>, %arg2: memref<64x32xf32, #tpu.memory_space<vmem>>, %arg3: memref<4x16xf32, #tpu.memory_space<vmem>>, %arg4: memref<4x128xf32, #tpu.memory_space<vmem>>, %arg5: memref<16x128xf32, #tpu.memory_space<vmem>>, %arg6: memref<16x128xf32, #tpu.memory_space<vmem>>, %arg7: memref<1x128xf32, #tpu.memory_space<vmem>>, %arg8: memref<128x128xf32, #tpu.memory_space<vmem>>, %arg9: memref<1x128xf32, #tpu.memory_space<vmem>>, %arg10: memref<128x32xf32, #tpu.memory_space<vmem>>, %arg11: memref<1x32xf32, #tpu.memory_space<vmem>>, %arg12: memref<128x32xf32, #tpu.memory_space<vmem>>, %arg13: memref<1x32xf32, #tpu.memory_space<vmem>>, %arg14: memref<32x4xf32, #tpu.memory_space<vmem>>, %arg15: memref<64x32xf32, #tpu.memory_space<vmem>>, %arg16: memref<64x4xf32, #tpu.memory_space<vmem>>) attributes {dimension_semantics = [#tpu.dimension_semantics<parallel>], iteration_bounds = array<i64: 2>, scalar_prefetch = 0 : i64, scratch_operands = 0 : i64, tpu.core_type = #tpu.core_type<tc>, window_params = [{transform_indices = @transform_0, window_bounds = array<i64: 64, 4>}, {transform_indices = @transform_1, window_bounds = array<i64: 64, 32>}, {pipeline_mode = #tpu.pipeline_mode<synchronous>, transform_indices = @transform_2, window_bounds = array<i64: 4, 16>}, {pipeline_mode = #tpu.pipeline_mode<synchronous>, transform_indices = @transform_3, window_bounds = array<i64: 4, 128>}, {pipeline_mode = #tpu.pipeline_mode<synchronous>, transform_indices = @transform_4, window_bounds = array<i64: 16, 128>}, {pipeline_mode = #tpu.pipeline_mode<synchronous>, transform_indices = @transform_5, window_bounds = array<i64: 16, 128>}, {pipeline_mode = #tpu.pipeline_mode<synchronous>, transform_indices = @transform_6, window_bounds = array<i64: 1, 128>}, {pipeline_mode = #tpu.pipeline_mode<synchronous>, transform_indices = @transform_7, window_bounds = array<i64: 128, 128>}, {pipeline_mode = #tpu.pipeline_mode<synchronous>, transform_indices = @transform_8, window_bounds = array<i64: 1, 128>}, {pipeline_mode = #tpu.pipeline_mode<synchronous>, transform_indices = @transform_9, window_bounds = array<i64: 128, 32>}, {pipeline_mode = #tpu.pipeline_mode<synchronous>, transform_indices = @transform_10, window_bounds = array<i64: 1, 32>}, {pipeline_mode = #tpu.pipeline_mode<synchronous>, transform_indices = @transform_11, window_bounds = array<i64: 128, 32>}, {pipeline_mode = #tpu.pipeline_mode<synchronous>, transform_indices = @transform_12, window_bounds = array<i64: 1, 32>}, {pipeline_mode = #tpu.pipeline_mode<synchronous>, transform_indices = @transform_13, window_bounds = array<i64: 32, 4>}, {transform_indices = @transform_14, window_bounds = array<i64: 64, 32>}, {transform_indices = @transform_15, window_bounds = array<i64: 64, 4>}]} {
    %c0 = arith.constant 0 : index
    %c0_0 = arith.constant 0 : index
    %0 = vector.load %arg1[%c0, %c0_0] : memref<64x4xf32, #tpu.memory_space<vmem>>, vector<64x4xf32>
    %c0_1 = arith.constant 0 : index
    %c0_2 = arith.constant 0 : index
    %1 = vector.load %arg3[%c0_1, %c0_2] : memref<4x16xf32, #tpu.memory_space<vmem>>, vector<4x16xf32>
    %cst = arith.constant dense<0.000000e+00> : vector<64x16xf32>
    %2 = tpu.matmul %0, %1, %cst {dimension_numbers = #tpu.dot_dimension_numbers<[1], [0], [0], [1], [0, 0, 1, 1], [], []>} : vector<64x4xf32>, vector<4x16xf32>, vector<64x16xf32> -> vector<64x16xf32>
    %3 = math.sin %2 : vector<64x16xf32>
    %4 = math.cos %2 : vector<64x16xf32>
    %c0_3 = arith.constant 0 : index
    %c0_4 = arith.constant 0 : index
    %5 = vector.load %arg4[%c0_3, %c0_4] : memref<4x128xf32, #tpu.memory_space<vmem>>, vector<4x128xf32>
    %cst_5 = arith.constant dense<0.000000e+00> : vector<64x128xf32>
    %6 = tpu.matmul %0, %5, %cst_5 {dimension_numbers = #tpu.dot_dimension_numbers<[1], [0], [0], [1], [0, 0, 1, 1], [], []>} : vector<64x4xf32>, vector<4x128xf32>, vector<64x128xf32> -> vector<64x128xf32>
    %c0_6 = arith.constant 0 : index
    %c0_7 = arith.constant 0 : index
    %7 = vector.load %arg5[%c0_6, %c0_7] : memref<16x128xf32, #tpu.memory_space<vmem>>, vector<16x128xf32>
    %cst_8 = arith.constant dense<0.000000e+00> : vector<64x128xf32>
    %8 = tpu.matmul %3, %7, %cst_8 {dimension_numbers = #tpu.dot_dimension_numbers<[1], [0], [0], [1], [0, 0, 1, 1], [], []>} : vector<64x16xf32>, vector<16x128xf32>, vector<64x128xf32> -> vector<64x128xf32>
    %9 = arith.addf %6, %8 : vector<64x128xf32>
    %c0_9 = arith.constant 0 : index
    %c0_10 = arith.constant 0 : index
    %10 = vector.load %arg6[%c0_9, %c0_10] : memref<16x128xf32, #tpu.memory_space<vmem>>, vector<16x128xf32>
    %cst_11 = arith.constant dense<0.000000e+00> : vector<64x128xf32>
    %11 = tpu.matmul %4, %10, %cst_11 {dimension_numbers = #tpu.dot_dimension_numbers<[1], [0], [0], [1], [0, 0, 1, 1], [], []>} : vector<64x16xf32>, vector<16x128xf32>, vector<64x128xf32> -> vector<64x128xf32>
    %12 = arith.addf %9, %11 : vector<64x128xf32>
    %c0_12 = arith.constant 0 : index
    %c0_13 = arith.constant 0 : index
    %13 = vector.load %arg7[%c0_12, %c0_13] : memref<1x128xf32, #tpu.memory_space<vmem>>, vector<1x128xf32>
    %14 = vector.broadcast %13 : vector<1x128xf32> to vector<64x128xf32>
    %15 = arith.addf %12, %14 : vector<64x128xf32>
    %cst_14 = arith.constant 0.000000e+00 : f32
    %16 = vector.broadcast %cst_14 : f32 to vector<64x128xf32>
    %17 = arith.cmpf ogt, %15, %16 : vector<64x128xf32>
    %cst_15 = arith.constant 0.00999999977 : f32
    %18 = vector.broadcast %cst_15 : f32 to vector<64x128xf32>
    %19 = arith.mulf %18, %15 : vector<64x128xf32>
    %20 = arith.select %17, %15, %19 : vector<64x128xi1>, vector<64x128xf32>
    %c0_16 = arith.constant 0 : index
    %c0_17 = arith.constant 0 : index
    %21 = vector.load %arg8[%c0_16, %c0_17] : memref<128x128xf32, #tpu.memory_space<vmem>>, vector<128x128xf32>
    %cst_18 = arith.constant dense<0.000000e+00> : vector<64x128xf32>
    %22 = tpu.matmul %20, %21, %cst_18 {dimension_numbers = #tpu.dot_dimension_numbers<[1], [0], [0], [1], [0, 0, 1, 1], [], []>} : vector<64x128xf32>, vector<128x128xf32>, vector<64x128xf32> -> vector<64x128xf32>
    %c0_19 = arith.constant 0 : index
    %c0_20 = arith.constant 0 : index
    %23 = vector.load %arg9[%c0_19, %c0_20] : memref<1x128xf32, #tpu.memory_space<vmem>>, vector<1x128xf32>
    %24 = vector.broadcast %23 : vector<1x128xf32> to vector<64x128xf32>
    %25 = arith.addf %22, %24 : vector<64x128xf32>
    %cst_21 = arith.constant 0.000000e+00 : f32
    %26 = vector.broadcast %cst_21 : f32 to vector<64x128xf32>
    %27 = arith.cmpf ogt, %25, %26 : vector<64x128xf32>
    %cst_22 = arith.constant 0.00999999977 : f32
    %28 = vector.broadcast %cst_22 : f32 to vector<64x128xf32>
    %29 = arith.mulf %28, %25 : vector<64x128xf32>
    %30 = arith.select %27, %25, %29 : vector<64x128xi1>, vector<64x128xf32>
    %c0_23 = arith.constant 0 : index
    %c0_24 = arith.constant 0 : index
    %31 = vector.load %arg10[%c0_23, %c0_24] : memref<128x32xf32, #tpu.memory_space<vmem>>, vector<128x32xf32>
    %cst_25 = arith.constant dense<0.000000e+00> : vector<64x32xf32>
    %32 = tpu.matmul %30, %31, %cst_25 {dimension_numbers = #tpu.dot_dimension_numbers<[1], [0], [0], [1], [0, 0, 1, 1], [], []>} : vector<64x128xf32>, vector<128x32xf32>, vector<64x32xf32> -> vector<64x32xf32>
    %c0_26 = arith.constant 0 : index
    %c0_27 = arith.constant 0 : index
    %33 = vector.load %arg11[%c0_26, %c0_27] : memref<1x32xf32, #tpu.memory_space<vmem>>, vector<1x32xf32>
    %34 = vector.broadcast %33 : vector<1x32xf32> to vector<64x32xf32>
    %35 = arith.addf %32, %34 : vector<64x32xf32>
    %c0_28 = arith.constant 0 : index
    %c0_29 = arith.constant 0 : index
    %36 = vector.load %arg12[%c0_28, %c0_29] : memref<128x32xf32, #tpu.memory_space<vmem>>, vector<128x32xf32>
    %cst_30 = arith.constant dense<0.000000e+00> : vector<64x32xf32>
    %37 = tpu.matmul %30, %36, %cst_30 {dimension_numbers = #tpu.dot_dimension_numbers<[1], [0], [0], [1], [0, 0, 1, 1], [], []>} : vector<64x128xf32>, vector<128x32xf32>, vector<64x32xf32> -> vector<64x32xf32>
    %c0_31 = arith.constant 0 : index
    %c0_32 = arith.constant 0 : index
    %38 = vector.load %arg13[%c0_31, %c0_32] : memref<1x32xf32, #tpu.memory_space<vmem>>, vector<1x32xf32>
    %39 = vector.broadcast %38 : vector<1x32xf32> to vector<64x32xf32>
    %40 = arith.addf %37, %39 : vector<64x32xf32>
    %cst_33 = arith.constant -6.000000e+00 : f32
    %41 = vector.broadcast %cst_33 : f32 to vector<64x32xf32>
    %42 = arith.maximumf %40, %41 : vector<64x32xf32>
    %cst_34 = arith.constant 5.000000e-01 : f32
    %43 = vector.broadcast %cst_34 : f32 to vector<64x32xf32>
    %44 = arith.mulf %43, %42 : vector<64x32xf32>
    %45 = math.exp %44 : vector<64x32xf32>
    %46 = arith.mulf %45, %45 : vector<64x32xf32>
    %c0_35 = arith.constant 0 : index
    %c0_36 = arith.constant 0 : index
    %47 = vector.load %arg2[%c0_35, %c0_36] : memref<64x32xf32, #tpu.memory_space<vmem>>, vector<64x32xf32>
    %48 = arith.mulf %45, %47 : vector<64x32xf32>
    %49 = arith.addf %35, %48 : vector<64x32xf32>
    %c0_37 = arith.constant 0 : index
    %c0_38 = arith.constant 0 : index
    %50 = vector.load %arg15[%c0_37, %c0_38] : memref<64x32xf32, #tpu.memory_space<vmem>>, vector<64x32xf32>
    tpu.vector_store %arg15[%c0_37, %c0_38], %49 {strides = array<i32>} : memref<64x32xf32, #tpu.memory_space<vmem>>, vector<64x32xf32>,
    %51 = arith.mulf %35, %35 : vector<64x32xf32>
    %52 = arith.addf %46, %51 : vector<64x32xf32>
    %cst_39 = arith.constant 1.000000e+00 : f32
    %53 = vector.broadcast %cst_39 : f32 to vector<64x32xf32>
    %54 = arith.subf %52, %53 : vector<64x32xf32>
    %55 = arith.subf %54, %42 : vector<64x32xf32>
    %c0_40 = arith.constant 0 : index
    %c0_41 = arith.constant 0 : index
    %56 = vector.load %arg14[%c0_40, %c0_41] : memref<32x4xf32, #tpu.memory_space<vmem>>, vector<32x4xf32>
    %cst_42 = arith.constant dense<0.000000e+00> : vector<64x4xf32>
    %57 = tpu.matmul %55, %56, %cst_42 {dimension_numbers = #tpu.dot_dimension_numbers<[1], [0], [0], [1], [0, 0, 1, 1], [], []>} : vector<64x32xf32>, vector<32x4xf32>, vector<64x4xf32> -> vector<64x4xf32>
    %c0_43 = arith.constant 0 : index
    %c0_44 = arith.constant 0 : index
    %58 = vector.load %arg16[%c0_43, %c0_44] : memref<64x4xf32, #tpu.memory_space<vmem>>, vector<64x4xf32>
    tpu.vector_store %arg16[%c0_43, %c0_44], %57 {strides = array<i32>} : memref<64x4xf32, #tpu.memory_space<vmem>>, vector<64x4xf32>,
    return
  }
  func.func @transform_0(%arg0: i32) -> (i32, i32) {
    %c0_i32 = arith.constant 0 : i32
    %c0_i32_0 = arith.constant 0 : i32
    return %arg0, %c0_i32 : i32, i32
  }
  func.func @transform_1(%arg0: i32) -> (i32, i32) {
    %c0_i32 = arith.constant 0 : i32
    %c0_i32_0 = arith.constant 0 : i32
    return %arg0, %c0_i32 : i32, i32
  }
  func.func @transform_2(%arg0: i32) -> (i32, i32) {
    %c0_i32 = arith.constant 0 : i32
    %c0_i32_0 = arith.constant 0 : i32
    %c0_i32_1 = arith.constant 0 : i32
    return %c0_i32, %c0_i32_0 : i32, i32
  }
  func.func @transform_3(%arg0: i32) -> (i32, i32) {
    %c0_i32 = arith.constant 0 : i32
    %c0_i32_0 = arith.constant 0 : i32
    %c0_i32_1 = arith.constant 0 : i32
    return %c0_i32, %c0_i32_0 : i32, i32
  }
  func.func @transform_4(%arg0: i32) -> (i32, i32) {
    %c0_i32 = arith.constant 0 : i32
    %c0_i32_0 = arith.constant 0 : i32
    %c0_i32_1 = arith.constant 0 : i32
    return %c0_i32, %c0_i32_0 : i32, i32
  }
  func.func @transform_5(%arg0: i32) -> (i32, i32) {
    %c0_i32 = arith.constant 0 : i32
    %c0_i32_0 = arith.constant 0 : i32
    %c0_i32_1 = arith.constant 0 : i32
    return %c0_i32, %c0_i32_0 : i32, i32
  }
  func.func @transform_6(%arg0: i32) -> (i32, i32) {
    %c0_i32 = arith.constant 0 : i32
    %c0_i32_0 = arith.constant 0 : i32
    %c0_i32_1 = arith.constant 0 : i32
    return %c0_i32, %c0_i32_0 : i32, i32
  }
  func.func @transform_7(%arg0: i32) -> (i32, i32) {
    %c0_i32 = arith.constant 0 : i32
    %c0_i32_0 = arith.constant 0 : i32
    %c0_i32_1 = arith.constant 0 : i32
    return %c0_i32, %c0_i32_0 : i32, i32
  }
  func.func @transform_8(%arg0: i32) -> (i32, i32) {
    %c0_i32 = arith.constant 0 : i32
    %c0_i32_0 = arith.constant 0 : i32
    %c0_i32_1 = arith.constant 0 : i32
    return %c0_i32, %c0_i32_0 : i32, i32
  }
  func.func @transform_9(%arg0: i32) -> (i32, i32) {
    %c0_i32 = arith.constant 0 : i32
    %c0_i32_0 = arith.constant 0 : i32
    %c0_i32_1 = arith.constant 0 : i32
    return %c0_i32, %c0_i32_0 : i32, i32
  }
  func.func @transform_10(%arg0: i32) -> (i32, i32) {
    %c0_i32 = arith.constant 0 : i32
    %c0_i32_0 = arith.constant 0 : i32
    %c0_i32_1 = arith.constant 0 : i32
    return %c0_i32, %c0_i32_0 : i32, i32
  }
  func.func @transform_11(%arg0: i32) -> (i32, i32) {
    %c0_i32 = arith.constant 0 : i32
    %c0_i32_0 = arith.constant 0 : i32
    %c0_i32_1 = arith.constant 0 : i32
    return %c0_i32, %c0_i32_0 : i32, i32
  }
  func.func @transform_12(%arg0: i32) -> (i32, i32) {
    %c0_i32 = arith.constant 0 : i32
    %c0_i32_0 = arith.constant 0 : i32
    %c0_i32_1 = arith.constant 0 : i32
    return %c0_i32, %c0_i32_0 : i32, i32
  }
  func.func @transform_13(%arg0: i32) -> (i32, i32) {
    %c0_i32 = arith.constant 0 : i32
    %c0_i32_0 = arith.constant 0 : i32
    %c0_i32_1 = arith.constant 0 : i32
    return %c0_i32, %c0_i32_0 : i32, i32
  }
  func.func @transform_14(%arg0: i32) -> (i32, i32) {
    %c0_i32 = arith.constant 0 : i32
    %c0_i32_0 = arith.constant 0 : i32
    return %arg0, %c0_i32 : i32, i32
  }
  func.func @transform_15(%arg0: i32) -> (i32, i32) {
    %c0_i32 = arith.constant 0 : i32
    %c0_i32_0 = arith.constant 0 : i32
    return %arg0, %c0_i32 : i32, i32
  }
}

</mosaic_0001>

<bundles_post_ra>
// kernel: tpu_custom_call.1
= control target key start
LH: loop header
LB: loop body
LE: loop exit
PB: predicated region body
PF: predicated region fallthrough
CT: control target
= control target key end

     0   :  { %s4165_s18 = smov 0   ;;  %s5412_s0 = inlined_call_operand.vmem [shape: f32[128,4], index: 0, kind: input, shape index: {}]   ;;  %s5413_s1 = inlined_call_operand.vmem [shape: f32[128,32], index: 1, kind: input, shape index: {}]   ;;  %s5414_s2 = inlined_call_operand.vmem [shape: f32[4,16], index: 2, kind: input, shape index: {}]   ;;  %s5415_s3 = inlined_call_operand.vmem [shape: f32[4,128], index: 3, kind: input, shape index: {}]   ;;  %s5416_s4 = inlined_call_operand.vmem [shape: f32[16,128], index: 4, kind: input, shape index: {}]   ;;  %s5417_s5 = inlined_call_operand.vmem [shape: f32[16,128], index: 5, kind: input, shape index: {}]   ;;  %s5418_s6 = inlined_call_operand.vmem [shape: f32[1,128], index: 6, kind: input, shape index: {}]   ;;  %s5419_s7 = inlined_call_operand.vmem [shape: f32[128,128], index: 7, kind: input, shape index: {}]   ;;  %s5420_s8 = inlined_call_operand.vmem [shape: f32[1,128], index: 8, kind: input, shape index: {}]   ;;  %s5421_s9 = inlined_call_operand.vmem [shape: f32[128,32], index: 9, kind: input, shape index: {}]   ;;  %s5422_s10 = inlined_call_operand.vmem [shape: f32[1,32], index: 10, kind: input, shape index: {}]   ;;  %s5423_s11 = inlined_call_operand.vmem [shape: f32[128,32], index: 11, kind: input, shape index: {}]   ;;  %s5424_s12 = inlined_call_operand.vmem [shape: f32[1,32], index: 12, kind: input, shape index: {}]   ;;  %s5425_s13 = inlined_call_operand.vmem [shape: f32[32,4], index: 13, kind: input, shape index: {}]   ;;  %s5426_s14 = inlined_call_operand.vmem [shape: f32[128,32], index: 14, kind: output, shape index: {0}]   ;;  %s5427_s15 = inlined_call_operand.vmem [shape: f32[128,4], index: 15, kind: output, shape index: {1}]  }
   0x1 LB: > { %s3508_s19 = sadd.s32 4294967295, %s4077_s18   ;;  %p3512_p0 = scmp.ge.s32.totalorder %s4077_s18, 1  ;;  %s4077_s18 = sphi %s4165_s18, %s26_s18  }
   0x2   : > { %p452_p1 = scmp.lt.s32.totalorder %s4077_s18, 3 }
   0x4   : > { %p453_p2 = pnand %p3512_p0, %p452_p1 }
   0x5   : > { %s3513_s22 = sshll.u32 (!%p453_p2), %s3508_s19, 3 }
   0x6   : > { %456 = sbr.rel (%p453_p2) target bundleno = 1273 (0x4f9), region = 76  ;;  %p511_p3 = scmp.lt.s32.totalorder (!%p453_p2), %s3513_s22, 15 }
   0xb   : > { %v542_v0 = vld [vmem:[%s5414_s2] sm:$0xf]  ;;  %vm568_vm0 = vcmask 1043456   ;;  %s5443_s22 = smov (!%p511_p3, %s3513_s22), 15  ;;  %vm543_vm1 = vcmask 31744  }
   0xc   : > { %3763 = vmatprep.subr.msk.mxu0 %vm568_vm0, %v542_v0  ;;  %3975 = vmatprep.subr.msk.mxu1 %vm568_vm0, %v542_v0  ;;  %s4180_s23 = sshll.u32 %s5443_s22, 3  ;;  %v4079_v37 = vmov 683565275   ;;  %v4080_v41 = vmov 2475754826  }
   0xd   : > { %3764 = vmatpush3.msk.msra.mxu0 %vm568_vm0, %v542_v0  ;;  %3976 = vmatpush3.msk.msra.mxu1 %vm568_vm0, %v542_v0  ;;  %s514_s26 = scalar_lea.vmem %s5412_s0, %s4180_s23  ;;  %v4081_v43 = vmov 2131351028   ;;  %v4082_v45 = vmov 2102212464   ;;  %v4083_v47 = vmov 920167782   ;;  %s5328_s20 = scalar_lea.vmem %s5413_s1, %s4180_s23 }
   0xe   : > { %v534_v1 = vld [vmem:[%s514_s26] sm:$0xff]  ;;  %v4188_v3 = vld [vmem:[%s514_s26 + $0x8] sm:$0xff]  ;;  %v4195_v5 = vld [vmem:[%s514_s26 + $0x10] sm:$0xff]  ;;  %v4084_v54 = vmov 1326507024   ;;  %s5343_s24 = scalar_lea.vmem %s5426_s14, %s4180_s23  ;;  %s532_s27 = scalar_lea.vmem %s5427_s15, %s4180_s23 }
   0xf   : > { %v4186_v2 = vld [vmem:[%s514_s26 + $0x20] sm:$0xff]  ;;  %3765 = vmatprep.mubr.msk.f32.mxu0 %vm543_vm1, %v534_v1  ;;  %v4193_v4 = vld [vmem:[%s514_s26 + $0x28] sm:$0xff]  ;;  %v4197_v6 = vld [vmem:[%s514_s26 + $0x30] sm:$0xff] }
  0x10   : > { %3771 = vmatprep.mubr.msk.f32.mxu1 %vm543_vm1, %v4186_v2  ;;  %3766 = vmatmul.mubr.msk.f32.vlgmr.msra.gmra.mxu0 %vm543_vm1, %v4188_v3  ;;  %v4207_v7 = vld [vmem:[%s514_s26 + $0x18] sm:$0xff] }
  0x11   : > { %3772 = vmatmul.mubr.msk.f32.vlgmr.msra.gmra.mxu1 %vm543_vm1, %v4193_v4  ;;  %3768 = vmatprep.mubr.msk.f32.mxu0 %vm543_vm1, %v4195_v5  ;;  %v4209_v8 = vld [vmem:[%s514_s26 + $0x38] sm:$0xff] }
  0x12   : > { %3774 = vmatprep.mubr.msk.f32.mxu1 %vm543_vm1, %v4197_v6 }
  0x14   : > { %3769 = vmatmul.mubr.msk.f32.gmra.mxu0 %vm543_vm1, %v4207_v7 }
  0x15   : > { %3775 = vmatmul.mubr.msk.f32.gmra.mxu1 %vm543_vm1, %v4209_v8  ;;  %3795 = vmatprep.mubr.msk.f32.mxu0 %vm543_vm1, %v534_v1 }
  0xd0   : > { %v4216_v9 = vpop.f32.mrf.mxu0 }
  0xd1   : > { %v4218_v10 = vpop.f32.mrf.mxu1  ;;  %v781_v11 = vand.u32 2147483647, %v4216_v9  ;;  %v784_v12 = vand.u32 2139095040, %v4216_v9 }
  0xd2   : > { %v5428_v13 = vand.u32 2147483647, %v4218_v10  ;;  %v1200_v14 = vand.u32 2139095040, %v4218_v10  ;;  %v4224_v15 = vpop.f32.mrf.mxu0 }
  0xd3   : > { %v785_v16 = vshrl.u32 %v784_v12, 23  ;;  %v788_v17 = vand.u32 8388607, %v781_v11  ;;  %v680_v20 = vand.u32 2139095040, %v4224_v15 }
  0xd4   : > { %v1201_v18 = vshrl.u32 %v1200_v14, 23  ;;  %v1204_v19 = vand.u32 8388607, %v5428_v13 }
  0xd5   : > { %v3534_v21 = vadd.s32 4294967169, %v785_v16  ;;  %v681_v23 = vshrl.u32 %v680_v20, 23  ;;  %v789_v25 = vor.u32 8388608, %v788_v17 }
  0xd6   : > { %v3550_v22 = vadd.s32 4294967169, %v1201_v18  ;;  %v1205_v26 = vor.u32 8388608, %v1204_v19 }
  0xd7   : > { %v791_v24 = vadd.s32 1, %v3534_v21  ;;  %v3530_v28 = vadd.s32 4294967169, %v681_v23  ;;  %v4231_v33 = vshll.u32 %v789_v25, 8 }
  0xd8   : > { %v1207_v27 = vadd.s32 1, %v3550_v22  ;;  %v4233_v34 = vshll.u32 %v1205_v26, 8 }
  0xd9   : > { %vm792_vm2 = vcmp.gt.s32.totalorder %v791_v24, 0  ;;  %v4235_v35 = vadd.s32 1, %v3530_v28 }
  0xda   : > { %v793_v29 = vsel %vm792_vm2, %v791_v24, 0  ;;  %vm1208_vm3 = vcmp.gt.s32.totalorder %v1207_v27, 0 }
  0xdb   : > { %v794_v30 = vshrl.u32 %v793_v29, 5  ;;  %v795_v31 = vand.u32 31, %v793_v29  ;;  %v1209_v32 = vsel %vm1208_vm3, %v1207_v27, 0  ;;  %vm688_vm7 = vcmp.gt.s32.totalorder %v4235_v35, 0 }
  0xdc   : > { %v4238_v39 = vshrl.u32 %v1209_v32, 5  ;;  %v1211_v40 = vand.u32 31, %v1209_v32 }
  0xdd   : > { %v796_v36 = vsub.s32 32, %v795_v31  ;;  %v798_v38 = vshll.u32 %v4079_v37, %v795_v31  ;;  %v801_v42 = vshll.u32 %v4080_v41, %v795_v31  ;;  %v804_v44 = vshll.u32 %v4081_v43, %v795_v31 }
  0xde   : > { %v807_v46 = vshll.u32 %v4082_v45, %v795_v31  ;;  %v810_v48 = vshll.u32 %v4083_v47, %v795_v31  ;;  %vm813_vm4 = vcmp.lt.s32.totalorder %v794_v30, 1  ;;  %vm815_vm5 = vcmp.lt.s32.totalorder %v794_v30, 3 }
  0xdf   : > { %v799_v49 = vshrl.u32 %v4080_v41, %v796_v36  ;;  %v802_v50 = vshrl.u32 %v4081_v43, %v796_v36  ;;  %v805_v51 = vshrl.u32 %v4082_v45, %v796_v36  ;;  %v797_v52 = vshrl.u32 %v4079_v37, %v796_v36 }
  0xe0   : > { %v808_v53 = vshrl.u32 %v4083_v47, %v796_v36  ;;  %v811_v55 = vshrl.u32 %v4084_v54, %v796_v36  ;;  %v1212_v59 = vsub.s32 32, %v1211_v40  ;;  %vm816_vm6 = vcmp.lt.s32.totalorder %v794_v30, 4 }
  0xe1   : > { %v800_v56 = vor.u32 %v799_v49, %v798_v38  ;;  %v803_v57 = vor.u32 %v802_v50, %v801_v42  ;;  %v806_v58 = vor.u32 %v805_v51, %v804_v44  ;;  %v1214_v62 = vshll.u32 %v4079_v37, %v1211_v40 }
  0xe2   : > { %v809_v60 = vor.u32 %v808_v53, %v807_v46  ;;  %v812_v61 = vor.u32 %v811_v55, %v810_v48  ;;  %v1217_v18 = vshll.u32 %v4080_v41, %v1211_v40  ;;  %vm814_vm8 = vcmp.lt.s32.totalorder %v794_v30, 2 }
  0xe3   : > { %v817_v63 = vsel %vm813_vm4, %v797_v52, %v800_v56  ;;  %v818_v0 = vsel %vm816_vm6, %v806_v58, 2102212464  ;;  %v821_v1 = vsel %vm813_vm4, %v800_v56, %v803_v57  ;;  %v825_v12 = vsel %vm813_vm4, %v803_v57, %v806_v58 }
  0xe4   : > { %v819_v14 = vsel %vm815_vm5, %v803_v57, %v818_v0  ;;  %v822_v16 = vsel %vm816_vm6, %v809_v60, 920167782  ;;  %v826_v17 = vsel %vm816_vm6, %v812_v61, 1326507024  ;;  %v1215_v21 = vshrl.u32 %v4080_v41, %v1212_v59 }
  0xe5   : > { %v823_v19 = vsel %vm815_vm5, %v806_v58, %v822_v16  ;;  %v827_v20 = vsel %vm815_vm5, %v809_v60, %v826_v17  ;;  %v820_v22 = vsel %vm814_vm8, %v817_v63, %v819_v14  ;;  %v1218_v25 = vshrl.u32 %v4081_v43, %v1212_v59 }
  0xe6   : > { %v824_v23 = vsel %vm814_vm8, %v821_v1, %v823_v19  ;;  %v828_v24 = vsel %vm814_vm8, %v825_v12, %v827_v20  ;;  %v1216_v31 = vor.u32 %v1215_v21, %v1214_v62  ;;  %v1220_v30 = vshll.u32 %v4081_v43, %v1211_v40  ;;  %v4302_v20 = vpop.f32.mrf.mxu1 }
  0xe7   : > { %v4262_v26 = vmul.u32.u64.low %v4231_v33, %v828_v24  ;;  %v4263_v27 = vmul.u32.u64.high %v4231_v33, %v828_v24, %v4262_v26  ;;  %v4266_v28 = vmul.u32.u64.low %v4231_v33, %v824_v23  ;;  %v4267_v29 = vmul.u32.u64.high %v4231_v33, %v824_v23, %v4266_v28 }
  0xe8   : > { %v1219_v32 = vor.u32 %v1218_v25, %v1217_v18  ;;  %v1221_v36 = vshrl.u32 %v4082_v45, %v1212_v59  ;;  %v1223_v38 = vshll.u32 %v4082_v45, %v1211_v40  ;;  %v1224_v42 = vshrl.u32 %v4083_v47, %v1212_v59 }
  0xe9   : > { %v1226_v44 = vshll.u32 %v4083_v47, %v1211_v40  ;;  %v1227_v46 = vshrl.u32 %v4084_v54, %v1212_v59  ;;  %v836_v48 = vmul.u32 %v4231_v33, %v820_v22  ;;  %v1213_v49 = vshrl.u32 %v4079_v37, %v1212_v59 }
  0xea   : > { %v1222_v50 = vor.u32 %v1221_v36, %v1220_v30  ;;  %vm1229_vm9 = vcmp.lt.s32.totalorder %v4238_v39, 1  ;;  %vm838_vm10 = vc.u32 %v4263_v27, %v4266_v28  ;;  %v839_v51 = vadd.s32 1, %v4267_v29 }
  0xeb   : > { %v1225_v52 = vor.u32 %v1224_v42, %v1223_v38  ;;  %vm1231_vm11 = vcmp.lt.s32.totalorder %v4238_v39, 3  ;;  %v1228_v53 = vor.u32 %v1227_v46, %v1226_v44  ;;  %vm1230_vm12 = vcmp.lt.s32.totalorder %v4238_v39, 2 }
  0xec   : > { %vm1232_vm13 = vcmp.lt.s32.totalorder %v4238_v39, 4  ;;  %v1237_v40 = vsel %vm1229_vm9, %v1216_v31, %v1219_v32  ;;  %v840_v33 = vsel %vm838_vm10, %v839_v51, %v4267_v29  ;;  %v1241_v57 = vsel %vm1229_vm9, %v1219_v32, %v1222_v50 }
  0xed   : > { %v1234_v55 = vsel %vm1232_vm13, %v1222_v50, 2102212464  ;;  %v1238_v56 = vsel %vm1232_vm13, %v1225_v52, 920167782  ;;  %v841_v58 = vadd.s32 %v840_v33, %v836_v48  ;;  %v1233_v59 = vsel %vm1229_vm9, %v1213_v49, %v1216_v31 }
  0xee   : > { %v1239_v60 = vsel %vm1231_vm11, %v1222_v50, %v1238_v56  ;;  %v1242_v61 = vsel %vm1232_vm13, %v1228_v53, 1326507024  ;;  %v1235_v62 = vsel %vm1231_vm11, %v1219_v32, %v1234_v55  ;;  %v689_v1 = vsel %vm688_vm7, %v4235_v35, 0 }
  0xef   : > { %v1240_v63 = vsel %vm1230_vm12, %v1237_v40, %v1239_v60  ;;  %v1243_v0 = vsel %vm1231_vm11, %v1225_v52, %v1242_v61  ;;  %v842_v12 = vadd.s32 536870912, %v841_v58  ;;  %v1236_v35 = vsel %vm1230_vm12, %v1233_v59, %v1235_v62 }
  0xf0   : > { %v1244_v14 = vsel %vm1230_vm12, %v1241_v57, %v1243_v0  ;;  %v4294_v16 = vmul.u32.u64.low %v4233_v34, %v1240_v63  ;;  %v4295_v17 = vmul.u32.u64.high %v4233_v34, %v1240_v63, %v4294_v16  ;;  %v677_v22 = vand.u32 2147483647, %v4224_v15 }
  0xf1   : > { %v4299_v18 = vmul.u32.u64.low %v4233_v34, %v1244_v14  ;;  %v4300_v19 = vmul.u32.u64.high %v4233_v34, %v1244_v14, %v4299_v18  ;;  %v4304_v21 = vshrl.u32 %v842_v12, 30  ;;  %v691_v23 = vand.u32 31, %v689_v1 }
  0xf2   : > { %v1255_v25 = vadd.s32 1, %v4295_v17  ;;  %v1096_v29 = vand.u32 2139095040, %v4302_v20  ;;  %v1252_v31 = vmul.u32 %v4233_v34, %v1236_v35  ;;  %v684_v30 = vand.u32 8388607, %v677_v22 }
  0xf3   : > { %v844_v24 = vshll.u32 %v4304_v21, 30  ;;  %v692_v26 = vsub.s32 32, %v691_v23  ;;  %vm1254_vm14 = vc.u32 %v4300_v19, %v4294_v16  ;;  %v694_v38 = vshll.u32 %v4079_v37, %v691_v23 }
  0xf4   : > { %v1256_v39 = vsel %vm1254_vm14, %v1255_v25, %v4295_v17  ;;  %v690_v34 = vshrl.u32 %v689_v1, 5  ;;  %v697_v48 = vshll.u32 %v4080_v41, %v691_v23  ;;  %v1097_v49 = vshrl.u32 %v1096_v29, 23 }
  0xf5   : > { %v4315_v32 = vsub.s32 %v841_v58, %v844_v24  ;;  %v1257_v36 = vadd.s32 %v1256_v39, %v1252_v31  ;;  %v695_v42 = vshrl.u32 %v4080_v41, %v692_v26  ;;  %v698_v44 = vshrl.u32 %v4081_v43, %v692_v26 }
  0xf6   : > { %v700_v52 = vshll.u32 %v4081_v43, %v691_v23  ;;  %v701_v53 = vshrl.u32 %v4082_v45, %v692_v26  ;;  %v703_v55 = vshll.u32 %v4082_v45, %v691_v23  ;;  %v704_v56 = vshrl.u32 %v4083_v47, %v692_v26 }
  0xf7   : > { %v847_v46 = vsub.s32 0, %v4315_v32  ;;  %v1258_v50 = vadd.s32 536870912, %v1257_v36  ;;  %v696_v51 = vor.u32 %v695_v42, %v694_v38  ;;  %v699_v33 = vor.u32 %v698_v44, %v697_v48 }
  0xf8   : > { %v702_v58 = vor.u32 %v701_v53, %v700_v52  ;;  %v706_v59 = vshll.u32 %v4083_v47, %v691_v23  ;;  %v707_v60 = vshrl.u32 %v4084_v54, %v692_v26  ;;  %v685_v62 = vor.u32 8388608, %v684_v30 }
  0xf9   : > { %v3535_v40 = vmin.u32 %v847_v46, %v4315_v32  ;;  %v4330_v57 = vshrl.u32 %v1258_v50, 30  ;;  %v705_v63 = vor.u32 %v704_v56, %v703_v55  ;;  %v3546_v0 = vadd.s32 4294967169, %v1097_v49 }
  0xfa   : > { %v708_v12 = vor.u32 %v707_v60, %v706_v59  ;;  %vm709_vm15 = vcmp.lt.s32.totalorder %v690_v34, 1  ;;  %vm712_vm2 = vcmp.lt.s32.totalorder %v690_v34, 4  ;;  %vm711_vm3 = vcmp.lt.s32.totalorder %v690_v34, 3 }
  0xfb   : > { %v849_v61 = vclz %v3535_v40  ;;  %v1260_v1 = vshll.u32 %v4330_v57, 30  ;;  %v717_v17 = vsel %vm709_vm15, %v696_v51, %v699_v33  ;;  %v718_v18 = vsel %vm712_vm2, %v705_v63, 920167782 }
  0xfc   : > { %v714_v24 = vsel %vm712_vm2, %v702_v58, 2102212464  ;;  %v719_v23 = vsel %vm711_vm3, %v702_v58, %v718_v18  ;;  %v721_v25 = vsel %vm709_vm15, %v699_v33, %v702_v58  ;;  %v693_v29 = vshrl.u32 %v4079_v37, %v692_v26 }
  0xfd   : > { %v3536_v14 = vadd.s32 4294967294, %v849_v61  ;;  %v4336_v35 = vsub.s32 %v1257_v36, %v1260_v1  ;;  %vm710_vm5 = vcmp.lt.s32.totalorder %v690_v34, 2  ;;  %v722_v31 = vsel %vm712_vm2, %v708_v12, 1326507024 }
  0xfe   : > { %v720_v30 = vsel %vm710_vm5, %v717_v17, %v719_v23  ;;  %v723_v38 = vsel %vm711_vm3, %v705_v63, %v722_v31  ;;  %v725_v42 = vshll.u32 %v685_v62, 8  ;;  %v713_v36 = vsel %vm709_vm15, %v693_v29, %v696_v51 }
  0xff   : > { %vm3537_vm4 = vcmp.lt.s32.totalorder %v3536_v14, 0  ;;  %v1263_v39 = vsub.s32 0, %v4336_v35  ;;  %v715_v46 = vsel %vm711_vm3, %v699_v33, %v714_v24  ;;  %v724_v48 = vsel %vm710_vm5, %v721_v25, %v723_v38 }
 0x100   : > { %v4344_v44 = vsel %vm3537_vm4, 0, %v3536_v14  ;;  %v4350_v26 = vmul.u32.u64.low %v725_v42, %v724_v48  ;;  %v4351_v50 = vmul.u32.u64.high %v725_v42, %v724_v48, %v4350_v26  ;;  %v1103_v52 = vadd.s32 1, %v3546_v0 }
 0x101   : > { %v3551_v49 = vmin.u32 %v1263_v39, %v4336_v35  ;;  %v4353_v53 = vmul.u32.u64.low %v725_v42, %v720_v30  ;;  %v4354_v40 = vmul.u32.u64.high %v725_v42, %v720_v30, %v4353_v53  ;;  %v857_v55 = vsub.s32 4294967266, %v4344_v44 }
 0x102   : > { %vm1104_vm6 = vcmp.gt.s32.totalorder %v1103_v52, 0  ;;  %v716_v51 = vsel %vm710_vm5, %v713_v36, %v715_v46  ;;  %v1093_v59 = vand.u32 2147483647, %v4302_v20  ;;  %vm783_vm8 = vcmp.lt.s32.totalorder %v4216_v9, 0 }
 0x103   : > { %v1265_v56 = vclz %v3551_v49  ;;  %v1105_v58 = vsel %vm1104_vm6, %v1103_v52, 0  ;;  %vm734_vm7 = vc.u32 %v4351_v50, %v4353_v53  ;;  %v735_v33 = vadd.s32 1, %v4354_v40 }
 0x104   : > { %v1107_v60 = vand.u32 31, %v1105_v58  ;;  %v858_v61 = vadd.s32 127, %v857_v55  ;;  %v732_v63 = vmul.u32 %v725_v42, %v716_v51  ;;  %v837_v34 = vadd.s32 %v4266_v28, %v4263_v27 }
 0x105   : > { %v3552_v62 = vadd.s32 4294967294, %v1265_v56  ;;  %v736_v0 = vsel %vm734_vm7, %v735_v33, %v4354_v40  ;;  %v867_v14 = vsub.s32 4, %v4304_v21  ;;  %v1100_v17 = vand.u32 8388607, %v1093_v59 }
 0x106   : > { %v1108_v1 = vsub.s32 32, %v1107_v60  ;;  %v737_v12 = vadd.s32 %v736_v0, %v732_v63  ;;  %v853_v18 = vsub.s32 32, %v4344_v44  ;;  %v859_v24 = vshll.u32 %v858_v61, 23 }
 0x107   : > { %vm3553_vm9 = vcmp.lt.s32.totalorder %v3552_v62, 0  ;;  %v1110_v25 = vshll.u32 %v4079_v37, %v1107_v60  ;;  %v1113_v31 = vshll.u32 %v4080_v41, %v1107_v60  ;;  %v1106_v27 = vshrl.u32 %v1105_v58, 5 }
 0x108   : > { %v738_v23 = vadd.s32 536870912, %v737_v12  ;;  %v1111_v29 = vshrl.u32 %v4080_v41, %v1108_v1  ;;  %v1114_v39 = vshrl.u32 %v4081_v43, %v1108_v1  ;;  %v1116_v28 = vshll.u32 %v4081_v43, %v1107_v60 }
 0x109   : > { %v1117_v38 = vshrl.u32 %v4082_v45, %v1108_v1  ;;  %v868_v42 = vsel %vm783_vm8, %v867_v14, %v4304_v21  ;;  %v1101_v36 = vor.u32 8388608, %v1100_v17  ;;  %v1119_v46 = vshll.u32 %v4082_v45, %v1107_v60 }
 0x10a   : > { %v4375_v30 = vshrl.u32 %v738_v23, 30  ;;  %v1120_v48 = vshrl.u32 %v4083_v47, %v1108_v1  ;;  %v854_v49 = vshll.u32 %v4315_v32, %v4344_v44  ;;  %v855_v26 = vshrl.u32 %v837_v34, %v853_v18  ;;  %v4405_v18 = vpop.f32.mrf.mxu0 }
 0x10b   : > { %v4387_v52 = vsel %vm3553_vm9, 0, %v3552_v62  ;;  %v860_v55 = vor.u32 4788187, %v859_v24  ;;  %v1112_v56 = vor.u32 %v1111_v29, %v1110_v25  ;;  %v1115_v51 = vor.u32 %v1114_v39, %v1113_v31 }
 0x10c   : > { %v740_v40 = vshll.u32 %v4375_v30, 30  ;;  %v1121_v58 = vor.u32 %v1120_v48, %v1119_v46  ;;  %v1118_v21 = vor.u32 %v1117_v38, %v1116_v28  ;;  %v1122_v61 = vshll.u32 %v4083_v47, %v1107_v60 }
 0x10d   : > { %vm1125_vm10 = vcmp.lt.s32.totalorder %v1106_v27, 1  ;;  %v1273_v63 = vsub.s32 4294967266, %v4387_v52  ;;  %v1123_v32 = vshrl.u32 %v4084_v54, %v1108_v1  ;;  %vm1127_vm11 = vcmp.lt.s32.totalorder %v1106_v27, 3 }
 0x10e   : > { %v4390_v33 = vsub.s32 %v737_v12, %v740_v40  ;;  %vm1128_vm12 = vcmp.lt.s32.totalorder %v1106_v27, 4  ;;  %vm4397_vm13 = vcmp.le.f32.partialorder %v781_v11, 0.7853982  ;;  %v856_v62 = vor.u32 %v855_v26, %v854_v49 }
 0x10f   : > { %v1109_v12 = vshrl.u32 %v4079_v37, %v1108_v1  ;;  %v1141_v34 = vshll.u32 %v1101_v36, 8  ;;  %v1124_v60 = vor.u32 %v1123_v32, %v1122_v61  ;;  %vm1126_vm14 = vcmp.lt.s32.totalorder %v1106_v27, 2  ;;  %v2334_v27 = vld [vmem:[%s5416_s4] sm:$0xff] }
 0x110   : > { %v743_v0 = vsub.s32 0, %v4390_v33  ;;  %v1133_v14 = vsel %vm1125_vm10, %v1112_v56, %v1115_v51  ;;  %v1134_v17 = vsel %vm1128_vm12, %v1121_v58, 920167782  ;;  %v861_v24 = vand.u32 2147483647, %v860_v55 }
 0x111   : > { %v1130_v23 = vsel %vm1128_vm12, %v1118_v21, 2102212464  ;;  %v1135_v25 = vsel %vm1127_vm11, %v1118_v21, %v1134_v17  ;;  %v1274_v29 = vadd.s32 127, %v1273_v63  ;;  %v1137_v1 = vsel %vm1125_vm10, %v1115_v51, %v1118_v21 }
 0x112   : > { %v3531_v11 = vmin.u32 %v743_v0, %v4390_v33  ;;  %v1136_v31 = vsel %vm1126_vm14, %v1133_v14, %v1135_v25  ;;  %v1138_v39 = vsel %vm1128_vm12, %v1124_v60, 1326507024  ;;  %v1129_v38 = vsel %vm1125_vm10, %v1109_v12, %v1112_v56 }
 0x113   : > { %v1139_v36 = vsel %vm1127_vm11, %v1121_v58, %v1138_v39  ;;  %v992_v46 = vand.u32 2139095040, %v4405_v18  ;;  %v1131_v48 = vsel %vm1127_vm11, %v1115_v51, %v1130_v23  ;;  %v863_v55 = vcvt.s32.f32 %v856_v62  ;;  %v4429_v51 = vpop.f32.mrf.mxu1 }
 0x114   : > { %v745_v28 = vclz %v3531_v11  ;;  %v1140_v49 = vsel %vm1126_vm14, %v1137_v1, %v1139_v36  ;;  %v4418_v26 = vmul.u32.u64.low %v1141_v34, %v1136_v31  ;;  %v4419_v40 = vmul.u32.u64.high %v1141_v34, %v1136_v31, %v4418_v26 }
 0x115   : > { %v4422_v21 = vmul.u32.u64.low %v1141_v34, %v1140_v49  ;;  %v4423_v63 = vmul.u32.u64.high %v1141_v34, %v1140_v49, %v4422_v21  ;;  %v1253_v56 = vadd.s32 %v4294_v16, %v4300_v19  ;;  %v1269_v58 = vsub.s32 32, %v4387_v52  ;;  %v4469_v49 = vpop.f32.mrf.mxu0 }
 0x116   : > { %v3532_v61 = vadd.s32 4294967294, %v745_v28  ;;  %v989_v32 = vand.u32 2147483647, %v4405_v18  ;;  %v993_v0 = vshrl.u32 %v992_v46, 23  ;;  %v864_v12 = vmul.f32 %v863_v55, %v861_v24  ;;  %v2335_v24 = vld [vmem:[%s5416_s4 + $0x8] sm:$0xff] }
 0x117   : > { %v1275_v60 = vshll.u32 %v1274_v29, 23  ;;  %v1132_v14 = vsel %vm1126_vm14, %v1129_v38, %v1131_v48  ;;  %v4434_v62 = vsel %vm4397_vm13, 0, %v868_v42  ;;  %v1151_v16 = vadd.s32 1, %v4419_v40  ;;  %v2333_v42 = vld [vmem:[%s5415_s3] sm:$0xf]  ;;  %3777 = vmatprep.subr.mxu1 %v2335_v24 }
 0x118   : > { %vm3533_vm15 = vcmp.lt.s32.totalorder %v3532_v61, 0  ;;  %v3542_v19 = vadd.s32 4294967169, %v993_v0  ;;  %v1408_v23 = vand.u32 2139095040, %v4429_v51  ;;  %v1271_v25 = vshrl.u32 %v1253_v56, %v1269_v58  ;;  %3793 = vmatprep.subr.msk.mxu0 %vm568_vm0, %v2333_v42  ;;  %3778 = vmatpush3.msra.mxu1 %v2335_v24 }
 0x119   : > { %v4436_v17 = vsel %vm3533_vm15, 0, %v3532_v61  ;;  %v1148_v29 = vmul.u32 %v1141_v34, %v1132_v14  ;;  %vm1150_vm2 = vc.u32 %v4423_v63, %v4418_v26  ;;  %v865_v1 = vxor.u32 2147483648, %v864_v12  ;;  %3794 = vmatpush3.msk.msra.mxu0 %vm568_vm0, %v2333_v42  ;;  %v4463_v34 = vld [vmem:[%s5417_s5 + $0x8] sm:$0xff]  ;;  %3779 = vmatprep.subr.mxu1 %v2334_v27 }
 0x11a   : > { %v753_v11 = vsub.s32 4294967266, %v4436_v17  ;;  %v999_v31 = vadd.s32 1, %v3542_v19  ;;  %v4454_v39 = vadd.s32 3, %v4434_v62  ;;  %v4456_v28 = vor.u32 4788187, %v1275_v60  ;;  %3796 = vmatmul.mubr.msk.f32.vlgmr.msra.gmra.mxu0 %vm543_vm1, %v4188_v3  ;;  %3780 = vmatpush3.msra.mxu1 %v2334_v27 }
 0x11b   : > { %v1152_v38 = vsel %vm1150_vm2, %v1151_v16, %v4419_v40  ;;  %v1270_v36 = vshll.u32 %v4336_v35, %v4387_v52  ;;  %v996_v48 = vand.u32 8388607, %v989_v32  ;;  %v733_v40 = vadd.s32 %v4353_v53, %v4351_v50  ;;  %3798 = vmatprep.mubr.msk.f32.mxu0 %vm543_vm1, %v4195_v5  ;;  %3807 = vmatprep.subr.mxu1 %v4463_v34 }
 0x11c   : > { %v1153_v46 = vadd.s32 %v1152_v38, %v1148_v29  ;;  %vm1000_vm3 = vcmp.gt.s32.totalorder %v999_v31, 0  ;;  %v754_v55 = vadd.s32 127, %v753_v11  ;;  %v1409_v21 = vshrl.u32 %v1408_v23, 23 }
 0x11d   : > { %v1001_v61 = vsel %vm1000_vm3, %v999_v31, 0  ;;  %v4477_v35 = vor.u32 %v1271_v25, %v1270_v36  ;;  %v763_v52 = vsub.s32 4, %v4375_v30  ;;  %v4483_v3 = vsel %vm783_vm8, %v865_v1, %v864_v12 }
 0x11e   : > { %v1154_v56 = vadd.s32 536870912, %v1153_v46  ;;  %v1003_v58 = vand.u32 31, %v1001_v61  ;;  %v1277_v50 = vand.u32 2147483647, %v4456_v28  ;;  %v1405_v53 = vand.u32 2147483647, %v4429_v51  ;;  %3799 = vmatmul.mubr.msk.f32.gmra.mxu0 %vm543_vm1, %v4207_v7 }
 0x11f   : > { %v885_v0 = vand.u32 2147483647, %v4469_v49  ;;  %v749_v5 = vsub.s32 32, %v4436_v17  ;;  %v997_v14 = vor.u32 8388608, %v996_v48  ;;  %v750_v19 = vshll.u32 %v4390_v33, %v4436_v17  ;;  %3801 = vmatprep.mubr.msk.f32.mxu0 %vm543_vm1, %v4186_v2 }
 0x120   : > { %v4489_v60 = vshrl.u32 %v1154_v56, 30  ;;  %v1004_v16 = vsub.s32 32, %v1003_v58  ;;  %v755_v12 = vshll.u32 %v754_v55, 23  ;;  %v1002_v11 = vshrl.u32 %v1001_v61, 5 }
 0x121   : > { %v3558_v23 = vadd.s32 4294967169, %v1409_v21  ;;  %v1006_v27 = vshll.u32 %v4079_v37, %v1003_v58  ;;  %v1009_v25 = vshll.u32 %v4080_v41, %v1003_v58  ;;  %v1012_v7 = vshll.u32 %v4081_v43, %v1003_v58 }
 0x122   : > { %v1156_v24 = vshll.u32 %v4489_v60, 30  ;;  %v1007_v42 = vshrl.u32 %v4080_v41, %v1004_v16  ;;  %v1010_v29 = vshrl.u32 %v4081_v43, %v1004_v16  ;;  %v1013_v33 = vshrl.u32 %v4082_v45, %v1004_v16  ;;  %3802 = vmatmul.mubr.msk.f32.gmra.mxu0 %vm543_vm1, %v4193_v4 }
 0x123   : > { %v1016_v17 = vshrl.u32 %v4083_v47, %v1004_v16  ;;  %v1015_v2 = vshll.u32 %v4082_v45, %v1003_v58  ;;  %v1019_v1 = vshrl.u32 %v4084_v54, %v1004_v16  ;;  %v4509_v38 = vshll.u32 %v997_v14, 8  ;;  %3804 = vmatprep.mubr.msk.f32.mxu0 %vm543_vm1, %v4197_v6 }
 0x124   : > { %v4505_v31 = vsub.s32 %v1153_v46, %v1156_v24  ;;  %v1008_v36 = vor.u32 %v1007_v42, %v1006_v27  ;;  %v1011_v48 = vor.u32 %v1010_v29, %v1009_v25  ;;  %v1014_v55 = vor.u32 %v1013_v33, %v1012_v7 }
 0x125   : > { %v1018_v61 = vshll.u32 %v4083_v47, %v1003_v58  ;;  %v751_v21 = vshrl.u32 %v733_v40, %v749_v5  ;;  %v1017_v56 = vor.u32 %v1016_v17, %v1015_v2  ;;  %v4519_v24 = vand.u32 8388607, %v1405_v53 }
 0x126   : > { %v1159_v46 = vsub.s32 0, %v4505_v31  ;;  %v756_v14 = vor.u32 4788187, %v755_v12  ;;  %vm1024_vm0 = vcmp.lt.s32.totalorder %v1002_v11, 4  ;;  %v1415_v4 = vadd.s32 1, %v3558_v23  ;;  %3805 = vmatmul.mubr.msk.f32.gmra.mxu0 %vm543_vm1, %v4209_v8 }
 0x127   : > { %v1020_v13 = vor.u32 %v1019_v1, %v1018_v61  ;;  %v1005_v42 = vshrl.u32 %v4079_v37, %v1004_v16  ;;  %vm1021_vm4 = vcmp.lt.s32.totalorder %v1002_v11, 1  ;;  %v1026_v58 = vsel %vm1024_vm0, %v1014_v55, 2102212464 }
 0x128   : > { %v3547_v27 = vmin.u32 %v1159_v46, %v4505_v31  ;;  %vm1022_vm5 = vcmp.lt.s32.totalorder %v1002_v11, 2  ;;  %vm1023_vm6 = vcmp.lt.s32.totalorder %v1002_v11, 3  ;;  %v1029_v6 = vsel %vm1021_vm4, %v1008_v36, %v1011_v48 }
 0x129   : > { %v1030_v40 = vsel %vm1024_vm0, %v1017_v56, 920167782  ;;  %v1025_v12 = vsel %vm1021_vm4, %v1005_v42, %v1008_v36  ;;  %v1027_v25 = vsel %vm1023_vm6, %v1011_v48, %v1026_v58  ;;  %v752_v23 = vor.u32 %v751_v21, %v750_v19 }
 0x12a   : > { %v1161_v5 = vclz %v3547_v27  ;;  %v1031_v29 = vsel %vm1023_vm6, %v1014_v55, %v1030_v40  ;;  %v1033_v33 = vsel %vm1021_vm4, %v1011_v48, %v1014_v55  ;;  %v1034_v16 = vsel %vm1024_vm0, %v1020_v13, 1326507024 }
 0x12b   : > { %v1032_v7 = vsel %vm1022_vm5, %v1029_v6, %v1031_v29  ;;  %v1035_v2 = vsel %vm1023_vm6, %v1017_v56, %v1034_v16  ;;  %v757_v61 = vand.u32 2147483647, %v756_v14  ;;  %v1028_v46 = vsel %vm1022_vm5, %v1025_v12, %v1027_v25 }
 0x12c   : > { %v3548_v17 = vadd.s32 4294967294, %v1161_v5  ;;  %v4530_v1 = vmul.u32.u64.low %v4509_v38, %v1032_v7  ;;  %v4531_v8 = vmul.u32.u64.high %v4509_v38, %v1032_v7, %v4530_v1  ;;  %v1036_v36 = vsel %vm1022_vm5, %v1033_v33, %v1035_v2 }
 0x12d   : > { %vm1416_vm7 = vcmp.gt.s32.totalorder %v1415_v4, 0  ;;  %v4537_v19 = vmul.u32.u64.low %v4509_v38, %v1036_v36  ;;  %v4538_v21 = vmul.u32.u64.high %v4509_v38, %v1036_v36, %v4537_v19  ;;  %v759_v13 = vcvt.s32.f32 %v752_v23 }
 0x12e   : > { %vm3549_vm8 = vcmp.lt.s32.totalorder %v3548_v17, 0  ;;  %v1417_v48 = vsel %vm1416_vm7, %v1415_v4, 0  ;;  %v1149_v55 = vadd.s32 %v4418_v26, %v4423_v63  ;;  %v1047_v14 = vadd.s32 1, %v4531_v8 }
 0x12f   : > { %v1164_v56 = vsel %vm3549_vm8, 0, %v3548_v17  ;;  %v1419_v27 = vand.u32 31, %v1417_v48  ;;  %v1413_v11 = vor.u32 8388608, %v4519_v24  ;;  %v760_v6 = vmul.f32 %v759_v13, %v757_v61 }
 0x130   : > { %v1165_v42 = vsub.s32 32, %v1164_v56  ;;  %v1169_v58 = vsub.s32 4294967266, %v1164_v56  ;;  %v1044_v40 = vmul.u32 %v4509_v38, %v1028_v46  ;;  %v4545_v5 = vshrl.u32 %v1417_v48, 5 }
 0x131   : > { %v1420_v12 = vsub.s32 32, %v1419_v27  ;;  %vm1046_vm9 = vc.u32 %v4538_v21, %v4530_v1  ;;  %v1422_v26 = vshll.u32 %v4079_v37, %v1419_v27  ;;  %v1425_v63 = vshll.u32 %v4080_v41, %v1419_v27 }
 0x132   : > { %v1170_v25 = vadd.s32 127, %v1169_v58  ;;  %vm679_vm10 = vcmp.lt.s32.totalorder %v4224_v15, 0  ;;  %v1048_v4 = vsel %vm1046_vm9, %v1047_v14, %v4531_v8  ;;  %v1428_v38 = vshll.u32 %v4081_v43, %v1419_v27 }
 0x133   : > { %v1423_v24 = vshrl.u32 %v4080_v41, %v1420_v12  ;;  %v1426_v29 = vshrl.u32 %v4081_v43, %v1420_v12  ;;  %v1167_v23 = vshrl.u32 %v1149_v55, %v1165_v42  ;;  %v1049_v33 = vadd.s32 %v1048_v4, %v1044_v40 }
 0x134   : > { %v1171_v7 = vshll.u32 %v1170_v25, 23  ;;  %v1429_v16 = vshrl.u32 %v4082_v45, %v1420_v12  ;;  %v1166_v17 = vshll.u32 %v4505_v31, %v1164_v56  ;;  %v1431_v2 = vshll.u32 %v4082_v45, %v1419_v27 }
 0x135   : > { %v1432_v61 = vshrl.u32 %v4083_v47, %v1420_v12  ;;  %v888_v46 = vand.u32 2139095040, %v4469_v49  ;;  %v1050_v36 = vadd.s32 536870912, %v1049_v33  ;;  %v1424_v19 = vor.u32 %v1423_v24, %v1422_v26 }
 0x136   : > { %v1172_v8 = vor.u32 4788187, %v1171_v7  ;;  %v1427_v48 = vor.u32 %v1426_v29, %v1425_v63  ;;  %v1430_v13 = vor.u32 %v1429_v16, %v1428_v38  ;;  %v1434_v55 = vshll.u32 %v4083_v47, %v1419_v27 }
 0x137   : > { %v1433_v58 = vor.u32 %v1432_v61, %v1431_v2  ;;  %v1435_v42 = vshrl.u32 %v4084_v54, %v1420_v12  ;;  %vm4565_vm11 = vcmp.le.f32.partialorder %v677_v22, 0.7853982  ;;  %v761_v56 = vxor.u32 2147483648, %v760_v6 }
 0x138   : > { %v1168_v14 = vor.u32 %v1167_v23, %v1166_v17  ;;  %v4569_v40 = vshrl.u32 %v1050_v36, 30  ;;  %vm1437_vm12 = vcmp.lt.s32.totalorder %v4545_v5, 1  ;;  %v1421_v25 = vshrl.u32 %v4079_v37, %v1420_v12 }
 0x139   : > { %v1436_v26 = vor.u32 %v1435_v42, %v1434_v55  ;;  %vm1440_vm14 = vcmp.lt.s32.totalorder %v4545_v5, 4  ;;  %v889_v27 = vshrl.u32 %v888_v46, 23  ;;  %v1173_v63 = vand.u32 2147483647, %v1172_v8 }
 0x13a   : > { %v1052_v4 = vshll.u32 %v4569_v40, 30  ;;  %vm1438_vm15 = vcmp.lt.s32.totalorder %v4545_v5, 2  ;;  %vm1439_vm2 = vcmp.lt.s32.totalorder %v4545_v5, 3  ;;  %v1445_v22 = vsel %vm1437_vm12, %v1424_v19, %v1427_v48 }
 0x13b   : > { %v1446_v24 = vsel %vm1440_vm14, %v1433_v58, 920167782  ;;  %v1449_v29 = vsel %vm1437_vm12, %v1427_v48, %v1430_v13  ;;  %v1450_v38 = vsel %vm1440_vm14, %v1436_v26, 1326507024  ;;  %v762_v12 = vsel %vm679_vm10, %v761_v56, %v760_v6  ;;  %v2767_v6 = vld [vmem:[%s5419_s7 + $0x78] sm:$0xff]  ;;  %v2765_v56 = vld [vmem:[%s5419_s7 + $0x68] sm:$0xff] }
 0x13c   : > { %v1175_v23 = vcvt.s32.f32 %v1168_v14  ;;  %v4583_v7 = vsub.s32 %v1049_v33, %v1052_v4  ;;  %v1442_v16 = vsel %vm1440_vm14, %v1430_v13, 2102212464  ;;  %vm1095_vm3 = vcmp.lt.s32.totalorder %v4302_v20, 0  ;;  %v2766_v33 = vld [vmem:[%s5419_s7 + $0x70] sm:$0xff]  ;;  %3823 = vmatprep.subr.mxu0 %v2767_v6 }
 0x13d   : > { %v1441_v17 = vsel %vm1437_vm12, %v1421_v25, %v1424_v19  ;;  %v1447_v2 = vsel %vm1439_vm2, %v1430_v13, %v1446_v24  ;;  %v1451_v61 = vsel %vm1439_vm2, %v1433_v58, %v1450_v38  ;;  %v1453_v46 = vshll.u32 %v1413_v11, 8  ;;  %3824 = vmatpush3.msra.mxu0 %v2767_v6  ;;  %v4646_v38 = vpop.f32.mrf.mxu1 }
 0x13e   : > { %v1176_v8 = vmul.f32 %v1175_v23, %v1173_v63  ;;  %v1055_v36 = vsub.s32 0, %v4583_v7  ;;  %v1448_v19 = vsel %vm1438_vm15, %v1445_v22, %v1447_v2  ;;  %v1452_v13 = vsel %vm1438_vm15, %v1449_v29, %v1451_v61  ;;  %3825 = vmatprep.subr.mxu0 %v2766_v33 }
 0x13f   : > { %v1443_v11 = vsel %vm1439_vm2, %v1427_v48, %v1442_v16  ;;  %v4605_v58 = vmul.u32.u64.low %v1453_v46, %v1452_v13  ;;  %v4606_v55 = vmul.u32.u64.high %v1453_v46, %v1452_v13, %v4605_v58  ;;  %v3538_v42 = vadd.s32 4294967169, %v889_v27  ;;  %3826 = vmatpush3.msra.mxu0 %v2766_v33 }
 0x140   : > { %v4612_v14 = vand.u32 3, %v4454_v39  ;;  %v3543_v25 = vmin.u32 %v1055_v36, %v4583_v7  ;;  %v4615_v26 = vmul.u32.u64.low %v1453_v46, %v1448_v19  ;;  %v4616_v63 = vmul.u32.u64.high %v1453_v46, %v1448_v19, %v4615_v26  ;;  %3827 = vmatprep.subr.mxu0 %v2765_v56 }
 0x141   : > { %v4623_v48 = vsel %vm4397_vm13, %v4216_v9, %v4483_v3  ;;  %v1279_v27 = vcvt.s32.f32 %v4477_v35  ;;  %v765_v39 = vsel %vm4565_vm11, %v4224_v15, %v762_v12  ;;  %v895_v4 = vadd.s32 1, %v3538_v42  ;;  %3828 = vmatpush3.msra.mxu0 %v2765_v56 }
 0x142   : > { %v4634_v22 = vsel %vm679_vm10, %v763_v52, %v4375_v30  ;;  %v1177_v24 = vxor.u32 2147483648, %v1176_v8  ;;  %v1057_v29 = vclz %v3543_v25  ;;  %v1444_v44 = vsel %vm1438_vm15, %v1441_v17, %v1443_v11 }
 0x143   : > { %v4640_v35 = vmul.f32 %v1279_v27, %v1277_v50  ;;  %vm1462_vm13 = vc.u32 %v4606_v55, %v4615_v26  ;;  %v892_v3 = vand.u32 8388607, %v885_v0  ;;  %vm896_vm0 = vcmp.gt.s32.totalorder %v895_v4, 0 }
 0x144   : > { %4023 = vcosq.f32 %v765_v39  ;;  %v3544_v30 = vadd.s32 4294967294, %v1057_v29  ;;  %v1463_v52 = vadd.s32 1, %v4616_v63  ;;  %v897_v5 = vsel %vm896_vm0, %v895_v4, 0 }
 0x145   : > { %4025 = vsinq.f32 %v765_v39  ;;  %v1045_v28 = vadd.s32 %v4530_v1, %v4538_v21  ;;  %v1460_v50 = vmul.u32 %v1453_v46, %v1444_v44  ;;  %v899_v12 = vand.u32 31, %v897_v5 }
 0x146   : > { %v4653_v23 = vsel %vm1095_vm3, %v1177_v24, %v1176_v8  ;;  %vm3545_vm4 = vcmp.lt.s32.totalorder %v3544_v30, 0  ;;  %v1464_v16 = vsel %vm1462_vm13, %v1463_v52, %v4616_v63  ;;  %v1304_v17 = vand.u32 2139095040, %v4646_v38 }
 0x147   : > { %v1060_v2 = vsel %vm3545_vm4, 0, %v3544_v30  ;;  %v1465_v61 = vadd.s32 %v1464_v16, %v1460_v50  ;;  %v893_v6 = vor.u32 8388608, %v892_v3  ;;  %v900_v33 = vsub.s32 32, %v899_v12 }
 0x148   : > { %v1061_v36 = vsub.s32 32, %v1060_v2  ;;  %v1065_v19 = vsub.s32 4294967266, %v1060_v2  ;;  %v4657_v13 = vshrl.u32 %v897_v5, 5  ;;  %v902_v1 = vshll.u32 %v4079_v37, %v899_v12 }
 0x149   : > { %v1466_v21 = vadd.s32 536870912, %v1465_v61  ;;  %v903_v46 = vshrl.u32 %v4080_v41, %v900_v33  ;;  %v905_v8 = vshll.u32 %v4080_v41, %v899_v12  ;;  %v906_v11 = vshrl.u32 %v4081_v43, %v900_v33 }
 0x14a   : > { %v1062_v58 = vshll.u32 %v4583_v7, %v1060_v2  ;;  %v1063_v42 = vshrl.u32 %v1045_v28, %v1061_v36  ;;  %v1066_v56 = vadd.s32 127, %v1065_v19  ;;  %v909_v25 = vshrl.u32 %v4082_v45, %v900_v33 }
 0x14b   : > { %v4665_v63 = vshrl.u32 %v1466_v21, 30  ;;  %v904_v27 = vor.u32 %v903_v46, %v902_v1  ;;  %v907_v39 = vor.u32 %v906_v11, %v905_v8  ;;  %v908_v4 = vshll.u32 %v4081_v43, %v899_v12 }
 0x14c   : > { %v1064_v24 = vor.u32 %v1063_v42, %v1062_v58  ;;  %v1067_v29 = vshll.u32 %v1066_v56, 23  ;;  %v911_v44 = vshll.u32 %v4082_v45, %v899_v12  ;;  %v912_v3 = vshrl.u32 %v4083_v47, %v900_v33 }
 0x14d   : > { %v1468_v30 = vshll.u32 %v4665_v63, 30  ;;  %v910_v52 = vor.u32 %v909_v25, %v908_v4  ;;  %v914_v7 = vshll.u32 %v4083_v47, %v899_v12  ;;  %v915_v5 = vshrl.u32 %v4084_v54, %v900_v33 }
 0x14e   : > { %v1068_v28 = vor.u32 4788187, %v1067_v29  ;;  %v913_v50 = vor.u32 %v912_v3, %v911_v44  ;;  %v933_v16 = vshll.u32 %v893_v6, 8  ;;  %v1301_v2 = vand.u32 2147483647, %v4646_v38 }
 0x14f   : > { %vm4676_vm5 = vcmp.le.f32.partialorder %v1093_v59, 0.7853982  ;;  %v4680_v19 = vsub.s32 %v1465_v61, %v1468_v30  ;;  %v901_v1 = vshrl.u32 %v4079_v37, %v900_v33  ;;  %v916_v21 = vor.u32 %v915_v5, %v914_v7 }
 0x150   : > { %v1305_v46 = vshrl.u32 %v1304_v17, 23  ;;  %v1069_v12 = vand.u32 2147483647, %v1068_v28  ;;  %v1071_v8 = vcvt.s32.f32 %v1064_v24  ;;  %vm917_vm6 = vcmp.lt.s32.totalorder %v4657_v13, 1 }
 0x151   : > { %vm920_vm7 = vcmp.lt.s32.totalorder %v4657_v13, 4  ;;  %v4685_v6 = vpop.eup %4023  ;;  %v1471_v11 = vsub.s32 0, %v4680_v19  ;;  %vm918_vm8 = vcmp.lt.s32.totalorder %v4657_v13, 2  ;;  %v925_v61 = vsel %vm917_vm6, %v904_v27, %v907_v39 }
 0x152   : > { %v922_v59 = vsel %vm920_vm7, %v910_v52, 2102212464  ;;  %v4691_v58 = vpop.eup %4025  ;;  %vm1199_vm9 = vcmp.lt.s32.totalorder %v4218_v10, 0  ;;  %v1072_v17 = vmul.f32 %v1071_v8, %v1069_v12  ;;  %vm919_vm10 = vcmp.lt.s32.totalorder %v4657_v13, 3 }
 0x153   : > { %v926_v33 = vsel %vm920_vm7, %v913_v50, 920167782  ;;  %v929_v42 = vsel %vm917_vm6, %v907_v39, %v910_v52  ;;  %vm4699_vm12 = vcmp.le.f32.partialorder %v989_v32, 0.7853982  ;;  %v3559_v25 = vmin.u32 %v1471_v11, %v4680_v19 }
 0x154   : > { %v921_v4 = vsel %vm917_vm6, %v901_v1, %v904_v27  ;;  %v927_v24 = vsel %vm919_vm10, %v910_v52, %v926_v33  ;;  %v930_v29 = vsel %vm920_vm7, %v916_v21, 1326507024  ;;  %v1073_v44 = vxor.u32 2147483648, %v1072_v17 }
 0x155   : > { %v923_v3 = vsel %vm919_vm10, %v907_v39, %v922_v59  ;;  %v928_v30 = vsel %vm918_vm8, %v925_v61, %v927_v24  ;;  %v931_v7 = vsel %vm919_vm10, %v913_v50, %v930_v29  ;;  %v1473_v5 = vclz %v3559_v25 }
 0x156   : > { %v932_v32 = vsel %vm918_vm8, %v929_v42, %v931_v7  ;;  %v4710_v28 = vmul.u32.u64.low %v933_v16, %v928_v30  ;;  %v4711_v12 = vmul.u32.u64.high %v933_v16, %v928_v30, %v4710_v28  ;;  %v4716_v27 = vsel %vm4565_vm11, 0, %v4634_v22 }
 0x157   : > { %v4718_v52 = vmul.u32.u64.low %v933_v16, %v932_v32  ;;  %v4719_v1 = vmul.u32.u64.high %v933_v16, %v932_v32, %v4718_v52  ;;  %v3554_v39 = vadd.s32 4294967169, %v1305_v46  ;;  %v1281_v21 = vxor.u32 2147483648, %v4640_v35 }
 0x158   : > { %v3560_v8 = vadd.s32 4294967294, %v1473_v5  ;;  %v924_v50 = vsel %vm918_vm8, %v921_v4, %v923_v3  ;;  %v1308_v11 = vand.u32 8388607, %v1301_v2  ;;  %4027 = vcosq.f32 %v4623_v48 }
 0x159   : > { %v1181_v31 = vsel %vm4676_vm5, %v4302_v20, %v4653_v23  ;;  %vm991_vm11 = vcmp.lt.s32.totalorder %v4405_v18, 0  ;;  %v1311_v22 = vadd.s32 1, %v3554_v39  ;;  %4029 = vsinq.f32 %v4623_v48 }
 0x15a   : > { %v1074_v46 = vsel %vm991_vm11, %v1073_v44, %v1072_v17  ;;  %vm3561_vm14 = vcmp.lt.s32.totalorder %v3560_v8, 0  ;;  %v943_v13 = vadd.s32 1, %v4711_v12  ;;  %v940_v59 = vmul.u32 %v933_v16, %v924_v50 }
 0x15b   : > { %vm942_vm15 = vc.u32 %v4719_v1, %v4710_v28  ;;  %vm1312_vm2 = vcmp.gt.s32.totalorder %v1311_v22, 0  ;;  %v770_v61 = vadd.s32 3, %v4716_v27  ;;  %v4741_v23 = vsel %vm1199_vm9, %v1281_v21, %v4640_v35 }
 0x15c   : > { %4031 = vcosq.f32 %v1181_v31  ;;  %v944_v48 = vsel %vm942_vm15, %v943_v13, %v4711_v12  ;;  %v1309_v33 = vor.u32 8388608, %v1308_v11  ;;  %v4747_v17 = vsel %vm4699_vm12, %v4405_v18, %v1074_v46 }
 0x15d   : > { %v4749_v16 = vsel %vm3561_vm14, 0, %v3560_v8  ;;  %v945_v42 = vadd.s32 %v944_v48, %v940_v59  ;;  %v1313_v25 = vsel %vm1312_vm2, %v1311_v22, 0  ;;  %4033 = vsinq.f32 %v1181_v31 }
 0x15e   : > { %v1075_v4 = vsub.s32 4, %v4569_v40  ;;  %v1461_v35 = vadd.s32 %v4615_v26, %v4606_v55  ;;  %v1315_v24 = vand.u32 31, %v1313_v25  ;;  %v4754_v44 = vand.u32 3, %v770_v61 }
 0x15f   : > { %v946_v29 = vadd.s32 536870912, %v945_v42  ;;  %v774_v3 = vxor.u32 2147483648, %v4691_v58  ;;  %v777_v30 = vxor.u32 2147483648, %v4685_v6  ;;  %4035 = vsinq.f32 %v4747_v17 }
 0x160   : > { %v1481_v7 = vsub.s32 4294967266, %v4749_v16  ;;  %v1316_v5 = vsub.s32 32, %v1315_v24  ;;  %v4760_v32 = vshll.u32 %v1309_v33, 8  ;;  %v1318_v52 = vshll.u32 %v4079_v37, %v1315_v24 }
 0x161   : > { %v4762_v12 = vshrl.u32 %v946_v29, 30  ;;  %v1321_v55 = vshll.u32 %v4080_v41, %v1315_v24  ;;  %v1324_v26 = vshll.u32 %v4081_v43, %v1315_v24  ;;  %v1477_v39 = vsub.s32 32, %v4749_v16 }
 0x162   : > { %v4769_v21 = vadd.s32 %v4710_v28, %v4719_v1  ;;  %v1319_v8 = vshrl.u32 %v4080_v41, %v1316_v5  ;;  %v1327_v50 = vshll.u32 %v4082_v45, %v1315_v24  ;;  %v1314_v31 = vshrl.u32 %v1313_v25, 5 }
 0x163   : > { %v948_v11 = vshll.u32 %v4762_v12, 30  ;;  %v1322_v22 = vshrl.u32 %v4081_v43, %v1316_v5  ;;  %v1325_v46 = vshrl.u32 %v4082_v45, %v1316_v5  ;;  %v1478_v13 = vshll.u32 %v4680_v19, %v4749_v16 }
 0x164   : > { %v1482_v59 = vadd.s32 127, %v1481_v7  ;;  %v1328_v61 = vshrl.u32 %v4083_v47, %v1316_v5  ;;  %v1330_v28 = vshll.u32 %v4083_v47, %v1315_v24  ;;  %v1320_v41 = vor.u32 %v1319_v8, %v1318_v52 }
 0x165   : > { %v4780_v1 = vsub.s32 %v945_v42, %v948_v11  ;;  %v1323_v48 = vor.u32 %v1322_v22, %v1321_v55  ;;  %v1326_v33 = vor.u32 %v1325_v46, %v1324_v26  ;;  %v4782_v29 = vpop.eup %4027  ;;  %v1317_v25 = vshrl.u32 %v4079_v37, %v1316_v5 }
 0x166   : > { %v1329_v43 = vor.u32 %v1328_v61, %v1327_v50  ;;  %v1331_v45 = vshrl.u32 %v4084_v54, %v1316_v5  ;;  %vm772_vm13 = vcmp.lt.s32.totalorder %v4754_v44, 2  ;;  %v4787_v19 = vpop.eup %4029  ;;  %vm1333_vm0 = vcmp.lt.s32.totalorder %v1314_v31, 1 }
 0x167   : > { %v951_v16 = vsub.s32 0, %v4780_v1  ;;  %vm1335_vm4 = vcmp.lt.s32.totalorder %v1314_v31, 3  ;;  %vm769_vm6 = vweird.f32 %v4224_v15  ;;  %vm773_vm7 = vcmp.eq.s32.totalorder %v4754_v44, 0 }
 0x168   : > { %v1479_v47 = vshrl.u32 %v1461_v35, %v1477_v39  ;;  %v1483_v42 = vshll.u32 %v1482_v59, 23  ;;  %v1332_v24 = vor.u32 %v1331_v45, %v1330_v28  ;;  %vm1336_vm8 = vcmp.lt.s32.totalorder %v1314_v31, 4 }
 0x169   : > { %v4792_v37 = vpop.eup %4031  ;;  %v3539_v54 = vmin.u32 %v951_v16, %v4780_v1  ;;  %v1338_v7 = vsel %vm1336_vm8, %v1326_v33, 2102212464  ;;  %v1341_v5 = vsel %vm1333_vm0, %v1320_v41, %v1323_v48  ;;  %v1342_v52 = vsel %vm1336_vm8, %v1329_v43, 920167782 }
 0x16a   : > { %vm1334_vm10 = vcmp.lt.s32.totalorder %v1314_v31, 2  ;;  %v1337_v55 = vsel %vm1333_vm0, %v1317_v25, %v1320_v41  ;;  %v1343_v26 = vsel %vm1335_vm4, %v1326_v33, %v1342_v52  ;;  %v775_v35 = vsel %vm773_vm7, %v4685_v6, %v774_v3  ;;  %v4801_v39 = vpop.eup %4033 }
 0x16b   : > { %v953_v8 = vclz %v3539_v54  ;;  %v1339_v50 = vsel %vm1335_vm4, %v1323_v48, %v1338_v7  ;;  %v1344_v11 = vsel %vm1334_vm10, %v1341_v5, %v1343_v26  ;;  %v1345_v22 = vsel %vm1333_vm0, %v1323_v48, %v1326_v33 }
 0x16c   : > { %v1346_v46 = vsel %vm1336_vm8, %v1332_v24, 1326507024  ;;  %v4807_v59 = vmul.u32.u64.low %v4760_v32, %v1344_v11  ;;  %v4808_v61 = vmul.u32.u64.high %v4760_v32, %v1344_v11, %v4807_v59  ;;  %vm776_vm14 = vcmp.eq.s32.totalorder %v4754_v44, 2  ;;  %v4812_v28 = vpop.eup %4035 }
 0x16d   : > { %vm873_vm15 = vweird.f32 %v4216_v9  ;;  %v1484_v41 = vor.u32 4788187, %v1483_v42  ;;  %v3540_v25 = vadd.s32 4294967294, %v953_v8  ;;  %v1347_v45 = vsel %vm1335_vm4, %v1329_v43, %v1346_v46 }
 0x16e   : > { %vm2336_vm2 = vcmask 130048   ;;  %v1480_v16 = vor.u32 %v1479_v47, %v1478_v13  ;;  %v1340_v48 = vsel %vm1334_vm10, %v1337_v55, %v1339_v50  ;;  %v1348_v33 = vsel %vm1334_vm10, %v1345_v22, %v1347_v45 }
 0x16f   : > { %v778_v24 = vsel %vm776_vm14, %v777_v30, %v4691_v58  ;;  %vm3541_vm0 = vcmp.lt.s32.totalorder %v3540_v25, 0  ;;  %v4822_v54 = vmul.u32.u64.low %v4760_v32, %v1348_v33  ;;  %v4823_v7 = vmul.u32.u64.high %v4760_v32, %v1348_v33, %v4822_v54 }
 0x170   : > { %v779_v42 = vsel %vm772_vm13, %v775_v35, %v778_v24  ;;  %v956_v5 = vsel %vm3541_vm0, 0, %v3540_v25  ;;  %v1359_v43 = vadd.s32 1, %v4808_v61  ;;  %v878_v31 = vxor.u32 2147483648, %v4787_v19 }
 0x171   : > { %v780_v13 = vsel %vm769_vm6, nan, %v779_v42  ;;  %v1485_v47 = vand.u32 2147483647, %v1484_v41  ;;  %v957_v52 = vsub.s32 32, %v956_v5  ;;  %v961_v55 = vsub.s32 4294967266, %v956_v5 }
 0x172   : > { %3781 = vmatprep.mubr.msk.f32.mxu1 %vm2336_vm2, %v780_v13  ;;  %vm877_vm4 = vcmp.eq.s32.totalorder %v4612_v14, 0  ;;  %v958_v26 = vshll.u32 %v4780_v1, %v956_v5  ;;  %v1356_v44 = vmul.u32 %v4760_v32, %v1340_v48  ;;  %v881_v8 = vxor.u32 2147483648, %v4782_v29 }
 0x173   : > { %v879_v35 = vsel %vm877_vm4, %v4782_v29, %v878_v31  ;;  %v959_v50 = vshrl.u32 %v4769_v21, %v957_v52  ;;  %v962_v11 = vadd.s32 127, %v961_v55  ;;  %vm1358_vm13 = vc.u32 %v4823_v7, %v4807_v59 }
 0x174   : > { %vm880_vm7 = vcmp.eq.s32.totalorder %v4612_v14, 2  ;;  %v1487_v22 = vcvt.s32.f32 %v1480_v16  ;;  %v1360_v46 = vsel %vm1358_vm13, %v1359_v43, %v4808_v61  ;;  %vm876_vm8 = vcmp.lt.s32.totalorder %v4612_v14, 2  ;;  %v2574_v14 = vld [vmem:[%s5417_s5] sm:$0xff] }
 0x175   : > { %v882_v32 = vsel %vm880_vm7, %v881_v8, %v4787_v19  ;;  %v960_v1 = vor.u32 %v959_v50, %v958_v26  ;;  %v963_v41 = vshll.u32 %v962_v11, 23  ;;  %v1361_v25 = vadd.s32 %v1360_v46, %v1356_v44 }
 0x176   : > { %v883_v45 = vsel %vm876_vm8, %v879_v35, %v882_v32  ;;  %v1179_v21 = vsub.s32 4, %v4489_v60  ;;  %4037 = vcosq.f32 %v4747_v17  ;;  %v971_v48 = vsub.s32 4, %v4762_v12 }
 0x177   : > { %v884_v16 = vsel %vm873_vm15, nan, %v883_v45  ;;  %v5437_v61 = vand.u32 2147483647, %v4218_v10  ;;  %v1488_v24 = vmul.f32 %v1487_v22, %v1485_v47  ;;  %v964_v54 = vor.u32 4788187, %v963_v41 }
 0x178   : > { %v1362_v42 = vadd.s32 536870912, %v1361_v25  ;;  %3782 = vmatmul.mubr.msk.f32.vlgmr.msra.gmra.mxu1 %vm2336_vm2, %v884_v16  ;;  %vm887_vm14 = vcmp.lt.s32.totalorder %v4469_v49, 0  ;;  %v1076_v5 = vsel %vm991_vm11, %v1075_v4, %v4569_v40  ;;  %v967_v13 = vcvt.s32.f32 %v960_v1 }
 0x179   : > { %vm4858_vm10 = vcmp.le.f32.partialorder %v5437_v61, 0.7853982  ;;  %3808 = vmatpush3.msra.mxu1 %v4463_v34  ;;  %v965_v43 = vand.u32 2147483647, %v964_v54  ;;  %v1180_v52 = vsel %vm1095_vm3, %v1179_v21, %v4489_v60  ;;  %v1489_v34 = vxor.u32 2147483648, %v1488_v24 }
 0x17a   : > { %v1285_v17 = vsel %vm4858_vm10, %v4218_v10, %v4741_v23  ;;  %v4874_v47 = vshrl.u32 %v1362_v42, 30  ;;  %3809 = vmatprep.subr.mxu1 %v2574_v14  ;;  %v972_v23 = vsel %vm887_vm14, %v971_v48, %v4762_v12  ;;  %v1283_v40 = vsub.s32 4, %v4330_v57 }
 0x17b   : > { %3810 = vmatpush3.msra.mxu1 %v2574_v14  ;;  %v968_v55 = vmul.f32 %v967_v13, %v965_v43  ;;  %4039 = vcosq.f32 %v1285_v17  ;;  %v4886_v4 = vsel %vm4699_vm12, 0, %v1076_v5  ;;  %vm886_vm11 = vcmp.le.f32.partialorder %v885_v0, 0.7853982 }
 0x17c   : > { %v1364_v26 = vshll.u32 %v4874_v47, 30  ;;  %v4892_v60 = vsel %vm4676_vm5, 0, %v1180_v52  ;;  %v4894_v44 = vsel %vm886_vm11, 0, %v972_v23  ;;  %4041 = vsinq.f32 %v1285_v17 }
 0x17d   : > { %v969_v12 = vxor.u32 2147483648, %v968_v55  ;;  %vm1407_vm3 = vcmp.lt.s32.totalorder %v4429_v51, 0  ;;  %v1082_v36 = vadd.s32 3, %v4886_v4  ;;  %v978_v22 = vadd.s32 3, %v4894_v44 }
 0x17e   : > { %v4896_v35 = vsub.s32 %v1361_v25, %v1364_v26  ;;  %v1490_v56 = vsel %vm1407_vm3, %v1489_v34, %v1488_v24  ;;  %v1186_v46 = vadd.s32 3, %v4892_v60  ;;  %v1284_v32 = vsel %vm1199_vm9, %v1283_v40, %v4330_v57 }
 0x17f   : > { %v970_v50 = vsel %vm887_vm14, %v969_v12, %v968_v55  ;;  %vm4913_vm5 = vcmp.le.f32.partialorder %v1405_v53, 0.7853982  ;;  %v1705_v21 = vand.u32 3, %v4434_v62  ;;  %v4924_v57 = vand.u32 3, %v1082_v36 }
 0x180   : > { %v1367_v0 = vsub.s32 0, %v4896_v35  ;;  %v973_v11 = vsel %vm886_vm11, %v4469_v49, %v970_v50  ;;  %v1493_v25 = vsel %vm4913_vm5, %v4429_v51, %v1490_v56  ;;  %v4928_v53 = vsel %vm4858_vm10, 0, %v1284_v32 }
 0x181   : > { %4043 = vcosq.f32 %v973_v11  ;;  %v4930_v16 = vand.u32 3, %v978_v22  ;;  %v1086_v14 = vxor.u32 2147483648, %v4812_v28  ;;  %v4933_v61 = vand.u32 3, %v1186_v46 }
 0x182   : > { %v3555_v41 = vmin.u32 %v1367_v0, %v4896_v35  ;;  %4045 = vsinq.f32 %v973_v11  ;;  %v1491_v24 = vsub.s32 4, %v4665_v63  ;;  %v1602_v42 = vand.u32 3, %v4716_v27 }
 0x183   : > { %v4921_v45 = vpop.eup %4037  ;;  %4047 = vcosq.f32 %v1493_v25  ;;  %v1190_v17 = vxor.u32 2147483648, %v4801_v39  ;;  %v1193_v33 = vxor.u32 2147483648, %v4792_v37  ;;  %v1357_v5 = vadd.s32 %v4807_v59, %v4823_v7 }
 0x184   : > { %v1369_v48 = vclz %v3555_v41  ;;  %4049 = vsinq.f32 %v1493_v25  ;;  %v1089_v62 = vxor.u32 2147483648, %v4921_v45  ;;  %vm1085_vm12 = vcmp.eq.s32.totalorder %v4924_v57, 0 }
 0x185   : > { %v1290_v43 = vadd.s32 3, %v4928_v53  ;;  %vm984_vm0 = vcmp.eq.s32.totalorder %v4930_v16, 2  ;;  %v1087_v27 = vsel %vm1085_vm12, %v4921_v45, %v1086_v14  ;;  %vm1088_vm4 = vcmp.eq.s32.totalorder %v4924_v57, 2 }
 0x186   : > { %v3556_v54 = vadd.s32 4294967294, %v1369_v48  ;;  %vm1189_vm13 = vcmp.eq.s32.totalorder %v4933_v61, 0  ;;  %vm981_vm7 = vcmp.eq.s32.totalorder %v4930_v16, 0  ;;  %vm1192_vm8 = vcmp.eq.s32.totalorder %v4933_v61, 2 }
 0x187   : > { %vm1604_vm10 = vcmp.eq.s32.totalorder %v1602_v42, 0  ;;  %vm980_vm14 = vcmp.lt.s32.totalorder %v4930_v16, 2  ;;  %v1090_v7 = vsel %vm1088_vm4, %v1089_v62, %v4812_v28  ;;  %v1191_v34 = vsel %vm1189_vm13, %v4792_v37, %v1190_v17 }
 0x188   : > { %vm3557_vm9 = vcmp.lt.s32.totalorder %v3556_v54, 0  ;;  %v4950_v52 = vpop.eup %4039  ;;  %v1194_v55 = vsel %vm1192_vm8, %v1193_v33, %v4801_v39  ;;  %v1606_v26 = vsel %vm1604_vm10, %v4685_v6, %v774_v3  ;;  %vm977_vm11 = vweird.f32 %v4469_v49 }
 0x189   : > { %v1372_v13 = vsel %vm3557_vm9, 0, %v3556_v54  ;;  %v4967_v40 = vpop.eup %4041  ;;  %vm1607_vm9 = vcmp.eq.s32.totalorder %v1602_v42, 2  ;;  %v1291_v0 = vand.u32 3, %v1290_v43  ;;  %vm1603_vm12 = vcmp.lt.s32.totalorder %v1602_v42, 2 }
 0x18a   : > { %v1373_v23 = vsub.s32 32, %v1372_v13  ;;  %v1377_v59 = vsub.s32 4294967266, %v1372_v13  ;;  %v1374_v12 = vshll.u32 %v4896_v35, %v1372_v13  ;;  %v1609_v36 = vsel %vm1607_vm9, %v777_v30, %v4691_v58 }
 0x18b   : > { %vm1707_vm4 = vcmp.eq.s32.totalorder %v1705_v21, 0  ;;  %v4974_v46 = vsel %vm1603_vm12, %v1606_v26, %v1609_v36  ;;  %vm1710_vm13 = vcmp.eq.s32.totalorder %v1705_v21, 2  ;;  %v1294_v35 = vxor.u32 2147483648, %v4967_v40 }
 0x18c   : > { %v1375_v56 = vshrl.u32 %v1357_v5, %v1373_v23  ;;  %v1378_v50 = vadd.s32 127, %v1377_v59  ;;  %vm1706_vm8 = vcmp.lt.s32.totalorder %v1705_v21, 2  ;;  %v1709_v32 = vsel %vm1707_vm4, %v4782_v29, %v878_v31 }
 0x18d   : > { %v1712_v6 = vsel %vm1710_vm13, %v881_v8, %v4787_v19  ;;  %v1297_v25 = vxor.u32 2147483648, %v4950_v52  ;;  %vm1084_vm10 = vcmp.lt.s32.totalorder %v4924_v57, 2  ;;  %vm1188_vm9 = vcmp.lt.s32.totalorder %v4933_v61, 2 }
 0x18e   : > { %v1376_v11 = vor.u32 %v1375_v56, %v1374_v12  ;;  %v1379_v22 = vshll.u32 %v1378_v50, 23  ;;  %v4976_v3 = vpop.eup %4043  ;;  %v1713_v48 = vsel %vm1706_vm8, %v1709_v32, %v1712_v6  ;;  %v1091_v21 = vsel %vm1084_vm10, %v1087_v27, %v1090_v7 }
 0x18f   : > { %v4985_v58 = vpop.eup %4045  ;;  %v985_v41 = vxor.u32 2147483648, %v4976_v3  ;;  %v4994_v31 = vsel %vm873_vm15, nan, %v1713_v48  ;;  %v1195_v9 = vsel %vm1188_vm9, %v1191_v34, %v1194_v55  ;;  %vm1293_vm15 = vcmp.eq.s32.totalorder %v1291_v0, 0 }
 0x190   : > { %v1380_v30 = vor.u32 4788187, %v1379_v22  ;;  %v982_v54 = vxor.u32 2147483648, %v4985_v58  ;;  %v1383_v19 = vcvt.s32.f32 %v1376_v11  ;;  %v5001_v42 = vpop.eup %4047  ;;  %vm1296_vm12 = vcmp.eq.s32.totalorder %v1291_v0, 2 }
 0x191   : > { %v986_v8 = vsel %vm984_vm0, %v985_v41, %v4985_v58  ;;  %v5008_v61 = vpop.eup %4049  ;;  %v1295_v13 = vsel %vm1293_vm15, %v4950_v52, %v1294_v35  ;;  %v1298_v27 = vsel %vm1296_vm12, %v1297_v25, %v4967_v40  ;;  %vm1081_vm0 = vweird.f32 %v4405_v18 }
 0x192   : > { %v1381_v29 = vand.u32 2147483647, %v1380_v30  ;;  %v983_v57 = vsel %vm981_vm7, %v4976_v3, %v982_v54  ;;  %vm1185_vm7 = vweird.f32 %v4302_v20  ;;  %v1387_v7 = vsub.s32 4, %v4874_v47  ;;  %v2764_v20 = vld [vmem:[%s5419_s7 + $0x60] sm:$0xff] }
 0x193   : > { %v987_v43 = vsel %vm980_vm14, %v983_v57, %v986_v8  ;;  %v1092_v16 = vsel %vm1081_vm0, nan, %v1091_v21  ;;  %vm1292_vm14 = vcmp.lt.s32.totalorder %v1291_v0, 2  ;;  %vm1303_vm4 = vcmp.lt.s32.totalorder %v4646_v38, 0  ;;  %3829 = vmatprep.subr.mxu0 %v2764_v20 }
 0x194   : > { %v1384_v5 = vmul.f32 %v1383_v19, %v1381_v29  ;;  %v988_v23 = vsel %vm977_vm11, nan, %v987_v43  ;;  %v1196_v34 = vsel %vm1185_vm7, nan, %v1195_v9  ;;  %v1299_v55 = vsel %vm1292_vm14, %v1295_v13, %v1298_v27  ;;  %3830 = vmatpush3.msra.mxu0 %v2764_v20 }
 0x195   : > { %3784 = vmatprep.mubr.msk.f32.mxu1 %vm2336_vm2, %v988_v23  ;;  %v1492_v26 = vsel %vm1407_vm3, %v1491_v24, %v4665_v63  ;;  %vm1302_vm13 = vcmp.le.f32.partialorder %v1301_v2, 0.7853982  ;;  %vm1289_vm8 = vweird.f32 %v4218_v10  ;;  %v1388_v50 = vsel %vm1303_vm4, %v1387_v7, %v4874_v47 }
 0x196   : > { %v1385_v59 = vxor.u32 2147483648, %v1384_v5  ;;  %3785 = vmatmul.mubr.msk.f32.gmra.mxu1 %vm2336_vm2, %v1092_v16  ;;  %v1300_v0 = vsel %vm1289_vm8, nan, %v1299_v55  ;;  %v1494_v36 = vsel %vm4913_vm5, 0, %v1492_v26  ;;  %v1390_v63 = vsel %vm1302_vm13, 0, %v1388_v50  ;;  %v2760_v16 = vld [vmem:[%s5419_s7 + $0x40] sm:$0xff]  ;;  %v2757_v55 = vld [vmem:[%s5419_s7 + $0x28] sm:$0xff] }
 0x197   : > { %3787 = vmatprep.mubr.msk.f32.mxu1 %vm2336_vm2, %v1196_v34  ;;  %v1498_v2 = vadd.s32 3, %v1494_v36  ;;  %v1394_v24 = vadd.s32 3, %v1390_v63  ;;  %v1502_v22 = vxor.u32 2147483648, %v5008_v61  ;;  %v1505_v32 = vxor.u32 2147483648, %v5001_v42  ;;  %v2758_v34 = vld [vmem:[%s5419_s7 + $0x30] sm:$0xff]  ;;  %v2756_v26 = vld [vmem:[%s5419_s7 + $0x20] sm:$0xff] }
 0x198   : > { %v1386_v12 = vsel %vm1303_vm4, %v1385_v59, %v1384_v5  ;;  %v1808_v47 = vand.u32 3, %v4894_v44  ;;  %v1911_v21 = vand.u32 3, %v4886_v4  ;;  %v2014_v13 = vand.u32 3, %v4892_v60  ;;  %v2753_v50 = vld [vmem:[%s5419_s7 + $0x8] sm:$0xff] }
 0x199   : > { %v1389_v56 = vsel %vm1302_vm13, %v4646_v38, %v1386_v12  ;;  %v1499_v11 = vand.u32 3, %v1498_v2  ;;  %v1395_v6 = vand.u32 3, %v1394_v24  ;;  %vm1393_vm13 = vweird.f32 %v4646_v38  ;;  %v2762_v38 = vld [vmem:[%s5419_s7 + $0x50] sm:$0xff]  ;;  %v2755_v12 = vld [vmem:[%s5419_s7 + $0x18] sm:$0xff]  ;;  %v2917_v24 = vld [vmem:[%s5421_s9 + $0x68] sm:$0xff] }
 0x19a   : > { %4051 = vcosq.f32 %v1389_v56  ;;  %3788 = vmatmul.mubr.msk.f32.gmra.mxu1 %vm2336_vm2, %v1300_v0  ;;  %vm1810_vm14 = vcmp.eq.s32.totalorder %v1808_v47, 0  ;;  %vm1813_vm4 = vcmp.eq.s32.totalorder %v1808_v47, 2  ;;  %v1611_v60 = vsel %vm769_vm6, nan, %v4974_v46  ;;  %v2752_v0 = vld [vmem:[%s5419_s7] sm:$0xff]  ;;  %v2918_v2 = vld [vmem:[%s5421_s9 + $0x70] sm:$0xff] }
 0x19b   : > { %4053 = vsinq.f32 %v1389_v56  ;;  %vm1501_vm3 = vcmp.eq.s32.totalorder %v1499_v11, 0  ;;  %vm1504_vm10 = vcmp.eq.s32.totalorder %v1499_v11, 2  ;;  %vm1396_vm5 = vcmp.lt.s32.totalorder %v1395_v6, 2  ;;  %v2754_v56 = vld [vmem:[%s5419_s7 + $0x10] sm:$0xff] }
 0x19c   : > { %v1503_v1 = vsel %vm1501_vm3, %v5001_v42, %v1502_v22  ;;  %v1506_v48 = vsel %vm1504_vm10, %v1505_v32, %v5008_v61  ;;  %vm1397_vm9 = vcmp.eq.s32.totalorder %v1395_v6, 0  ;;  %vm1400_vm15 = vcmp.eq.s32.totalorder %v1395_v6, 2  ;;  %v2913_v6 = vld [vmem:[%s5421_s9 + $0x48] sm:$0xff] }
 0x19d   : > { %vm1500_vm12 = vcmp.lt.s32.totalorder %v1499_v11, 2  ;;  %v1812_v5 = vsel %vm1810_vm14, %v4976_v3, %v982_v54  ;;  %v1815_v43 = vsel %vm1813_vm4, %v985_v41, %v4985_v58  ;;  %vm1497_vm3 = vweird.f32 %v4429_v51  ;;  %v2759_v51 = vld [vmem:[%s5419_s7 + $0x38] sm:$0xff]  ;;  %v2916_v11 = vld [vmem:[%s5421_s9 + $0x60] sm:$0xff] }
 0x19e   : > { %v1507_v44 = vsel %vm1500_vm12, %v1503_v1, %v1506_v48  ;;  %vm1809_vm10 = vcmp.lt.s32.totalorder %v1808_v47, 2  ;;  %vm2019_vm12 = vcmp.eq.s32.totalorder %v2014_v13, 2  ;;  %v2117_v54 = vand.u32 3, %v4928_v53  ;;  %v2912_v47 = vld [vmem:[%s5421_s9 + $0x40] sm:$0xff]  ;;  %v2910_v1 = vld [vmem:[%s5421_s9 + $0x30] sm:$0xff]  ;;  %v2909_v48 = vld [vmem:[%s5421_s9 + $0x28] sm:$0xff] }
 0x19f   : > { %v1508_v23 = vsel %vm1497_vm3, nan, %v1507_v44  ;;  %v1816_v3 = vsel %vm1809_vm10, %v1812_v5, %v1815_v43  ;;  %v2220_v46 = vand.u32 3, %v1390_v63  ;;  %vm1912_vm6 = vcmp.lt.s32.totalorder %v1911_v21, 2  ;;  %v5166_v63 = vld [vmem:[%s5423_s11 + $0x78] sm:$0xff] }
 0x1a0   : > { %vm2015_vm14 = vcmp.lt.s32.totalorder %v2014_v13, 2  ;;  %vm2119_vm4 = vcmp.eq.s32.totalorder %v2117_v54, 0  ;;  %vm2122_vm10 = vcmp.eq.s32.totalorder %v2117_v54, 2 }
 0x1a1   : > { %v2124_v49 = vsel %vm2122_vm10, %v1297_v25, %v4967_v40 }
 0x1a7   : > { %v4052_v30 = vpop.eup %4051 }
 0x1a8   : > { %v4054_v29 = vpop.eup %4053  ;;  %v1401_v19 = vxor.u32 2147483648, %v4052_v30 }
 0x1a9   : > { %v1398_v8 = vxor.u32 2147483648, %v4054_v29 }
 0x1aa   : > { %v1402_v57 = vsel %vm1400_vm15, %v1401_v19, %v4054_v29  ;;  %vm2016_vm15 = vcmp.eq.s32.totalorder %v2014_v13, 0 }
 0x1ab   : > { %v1399_v9 = vsel %vm1397_vm9, %v4052_v30, %v1398_v8  ;;  %vm1913_vm9 = vcmp.eq.s32.totalorder %v1911_v21, 0  ;;  %v2018_v15 = vsel %vm2016_vm15, %v4792_v37, %v1190_v17  ;;  %v2121_v37 = vsel %vm2119_vm4, %v4950_v52, %v1294_v35 }
 0x1ac   : > { %v1403_v27 = vsel %vm1396_vm5, %v1399_v9, %v1402_v57  ;;  %v1915_v58 = vsel %vm1913_vm9, %v4921_v45, %v1086_v14  ;;  %vm1916_vm5 = vcmp.eq.s32.totalorder %v1911_v21, 2  ;;  %v2021_v14 = vsel %vm2019_vm12, %v1193_v33, %v4801_v39 }
 0x1ad   : > { %v1404_v4 = vsel %vm1393_vm13, nan, %v1403_v27  ;;  %v1918_v41 = vsel %vm1916_vm5, %v1089_v62, %v4812_v28  ;;  %v1817_v45 = vsel %vm977_vm11, nan, %v1816_v3  ;;  %v2022_v53 = vsel %vm2015_vm14, %v2018_v15, %v2021_v14 }
 0x1ae   : > { %3790 = vmatprep.mubr.msk.f32.mxu1 %vm2336_vm2, %v1404_v4  ;;  %v1919_v28 = vsel %vm1912_vm6, %v1915_v58, %v1918_v41  ;;  %v2323_v62 = vand.u32 3, %v1494_v36  ;;  %vm2222_vm11 = vcmp.eq.s32.totalorder %v2220_v46, 0  ;;  %vm2225_vm9 = vcmp.eq.s32.totalorder %v2220_v46, 2  ;;  %v2919_v36 = vld [vmem:[%s5421_s9 + $0x78] sm:$0xff]  ;;  %v3619_v41 = vld [vmem:[%s5418_s6] ss:$0 sm:$0xff] }
 0x1af   : > { %3791 = vmatmul.mubr.msk.f32.gmra.mxu1 %vm2336_vm2, %v1508_v23  ;;  %v2224_v39 = vsel %vm2222_vm11, %v4052_v30, %v1398_v8  ;;  %v2227_v17 = vsel %vm2225_vm9, %v1401_v19, %v4054_v29  ;;  %v1920_v33 = vsel %vm1081_vm0, nan, %v1919_v28  ;;  %vm2118_vm5 = vcmp.lt.s32.totalorder %v2117_v54, 2  ;;  %3867 = vmatprep.subr.mxu1 %v2919_v36  ;;  %v2911_v30 = vld [vmem:[%s5421_s9 + $0x38] sm:$0xff]  ;;  %v2908_v29 = vld [vmem:[%s5421_s9 + $0x20] sm:$0xff] }
 0x1b0   : > { %3811 = vmatprep.mubr.msk.f32.mxu1 %vm2336_vm2, %v1611_v60  ;;  %v2125_v59 = vsel %vm2118_vm5, %v2121_v37, %v2124_v49  ;;  %vm2221_vm15 = vcmp.lt.s32.totalorder %v2220_v46, 2  ;;  %vm2325_vm12 = vcmp.eq.s32.totalorder %v2323_v62, 0  ;;  %vm2328_vm6 = vcmp.eq.s32.totalorder %v2323_v62, 2 }
 0x1b1   : > { %v2228_v52 = vsel %vm2221_vm15, %v2224_v39, %v2227_v17  ;;  %v2327_v40 = vsel %vm2325_vm12, %v5001_v42, %v1502_v22  ;;  %v2330_v18 = vsel %vm2328_vm6, %v1505_v32, %v5008_v61  ;;  %v2126_v35 = vsel %vm1289_vm8, nan, %v2125_v59  ;;  %v2763_v42 = vld [vmem:[%s5419_s7 + $0x58] sm:$0xff]  ;;  %v2761_v61 = vld [vmem:[%s5419_s7 + $0x48] sm:$0xff]  ;;  %v2914_v32 = vld [vmem:[%s5421_s9 + $0x50] sm:$0xff] }
 0x1b2   : > { %vm2324_vm0 = vcmp.lt.s32.totalorder %v2323_v62, 2  ;;  %v2229_v25 = vsel %vm1393_vm13, nan, %v2228_v52  ;;  %3831 = vmatprep.subr.mxu0 %v2763_v42  ;;  %v2915_v22 = vld [vmem:[%s5421_s9 + $0x58] sm:$0xff] }
 0x1b3   : > { %3812 = vmatmul.mubr.msk.f32.vlgmr.msra.gmra.mxu1 %vm2336_vm2, %v4994_v31  ;;  %v2023_v31 = vsel %vm1185_vm7, nan, %v2022_v53  ;;  %v2331_v7 = vsel %vm2324_vm0, %v2327_v40, %v2330_v18  ;;  %3832 = vmatpush3.msra.mxu0 %v2763_v42 }
 0x1b4   : > { %3814 = vmatprep.mubr.msk.f32.mxu1 %vm2336_vm2, %v1817_v45  ;;  %v2332_v10 = vsel %vm1497_vm3, nan, %v2331_v7  ;;  %3833 = vmatprep.subr.mxu0 %v2762_v38 }
 0x1b5   : > { %3834 = vmatpush3.msra.mxu0 %v2762_v38  ;;  %3868 = vmatpush3.msra.mxu1 %v2919_v36 }
 0x1b6   : > { %3835 = vmatprep.subr.mxu0 %v2761_v61  ;;  %3869 = vmatprep.subr.mxu1 %v2918_v2 }
 0x1b7   : > { %3815 = vmatmul.mubr.msk.f32.gmra.mxu1 %vm2336_vm2, %v1920_v33  ;;  %3836 = vmatpush3.msra.mxu0 %v2761_v61 }
 0x1b8   : > { %3817 = vmatprep.mubr.msk.f32.mxu1 %vm2336_vm2, %v2023_v31  ;;  %3837 = vmatprep.subr.mxu0 %v2760_v16 }
 0x1b9   : > { %3838 = vmatpush3.msra.mxu0 %v2760_v16  ;;  %3870 = vmatpush3.msra.mxu1 %v2918_v2 }
 0x1ba   : > { %3839 = vmatprep.subr.mxu0 %v2759_v51  ;;  %3871 = vmatprep.subr.mxu1 %v2917_v24 }
 0x1bb   : > { %3818 = vmatmul.mubr.msk.f32.gmra.mxu1 %vm2336_vm2, %v2126_v35  ;;  %3840 = vmatpush3.msra.mxu0 %v2759_v51 }
 0x1bc   : > { %3820 = vmatprep.mubr.msk.f32.mxu1 %vm2336_vm2, %v2229_v25  ;;  %3841 = vmatprep.subr.mxu0 %v2758_v34 }
 0x1bd   : > { %3842 = vmatpush3.msra.mxu0 %v2758_v34  ;;  %3872 = vmatpush3.msra.mxu1 %v2917_v24  ;;  %v3046_v34 = vld [vmem:[%s5423_s11 + $0x70] sm:$0xff] }
 0x1be   : > { %3843 = vmatprep.subr.mxu0 %v2757_v55  ;;  %3873 = vmatprep.subr.mxu1 %v2916_v11 }
 0x1bf   : > { %3821 = vmatmul.mubr.msk.f32.gmra.mxu1 %vm2336_vm2, %v2332_v10  ;;  %3844 = vmatpush3.msra.mxu0 %v2757_v55 }
 0x1c0   : > { %3845 = vmatprep.subr.mxu0 %v2756_v26  ;;  %3874 = vmatpush3.msra.mxu1 %v2916_v11 }
 0x1c1   : > { %3846 = vmatpush3.msra.mxu0 %v2756_v26  ;;  %3875 = vmatprep.subr.mxu1 %v2915_v22 }
 0x1c2   : > { %3847 = vmatprep.subr.mxu0 %v2755_v12  ;;  %3876 = vmatpush3.msra.mxu1 %v2915_v22 }
 0x1c3   : > { %3848 = vmatpush3.msra.mxu0 %v2755_v12  ;;  %3877 = vmatprep.subr.mxu1 %v2914_v32 }
 0x1c4   : > { %3849 = vmatprep.subr.mxu0 %v2754_v56  ;;  %3878 = vmatpush3.msra.mxu1 %v2914_v32 }
 0x1c5   : > { %3850 = vmatpush3.msra.mxu0 %v2754_v56  ;;  %3879 = vmatprep.subr.mxu1 %v2913_v6 }
 0x1c6   : > { %3851 = vmatprep.subr.mxu0 %v2753_v50  ;;  %3880 = vmatpush3.msra.mxu1 %v2913_v6 }
 0x1c7   : > { %3852 = vmatpush3.msra.mxu0 %v2753_v50  ;;  %3881 = vmatprep.subr.mxu1 %v2912_v47  ;;  %v3045_v50 = vld [vmem:[%s5423_s11 + $0x68] sm:$0xff] }
 0x1c8   : > { %3853 = vmatprep.subr.mxu0 %v2752_v0  ;;  %3882 = vmatpush3.msra.mxu1 %v2912_v47 }
 0x1c9   : > { %3854 = vmatpush3.msra.mxu0 %v2752_v0  ;;  %3883 = vmatprep.subr.mxu1 %v2911_v30 }
 0x1ca   : > { %3911 = vmatprep.subr.mxu0 %v5166_v63  ;;  %3884 = vmatpush3.msra.mxu1 %v2911_v30 }
 0x1cb   : > { %3885 = vmatprep.subr.mxu1 %v2910_v1 }
 0x1cc   : > { %3886 = vmatpush3.msra.mxu1 %v2910_v1  ;;  %v3043_v1 = vld [vmem:[%s5423_s11 + $0x58] sm:$0xff] }
 0x1cd   : > { %3887 = vmatprep.subr.mxu1 %v2909_v48 }
 0x1ce   : > { %3888 = vmatpush3.msra.mxu1 %v2909_v48 }
 0x1cf   : > { %3889 = vmatprep.subr.mxu1 %v2908_v29 }
 0x1d0   : > { %3890 = vmatpush3.msra.mxu1 %v2908_v29 }
 0x1da   : > { %v3797_v57 = vpop.f32.mrf.mxu0 }
 0x1dc   : > { %v2535_v9 = vpop.f32.mrf.mxu0 }
 0x1de   : > { %v3800_v43 = vpop.f32.mrf.mxu0 }
 0x1e0   : > { %v2545_v27 = vpop.f32.mrf.mxu0 }
 0x1e2   : > { %v3803_v23 = vpop.f32.mrf.mxu0 }
 0x1e4   : > { %v2555_v14 = vpop.f32.mrf.mxu0 }
 0x1e6   : > { %v3806_v33 = vpop.f32.mrf.mxu0 }
 0x1e8   : > { %v2565_v38 = vpop.f32.mrf.mxu0 }
 0x238   : > { %v3783_v19 = vpop.f32.mrf.mxu1 }
 0x239   : > { %v2541_v3 = vadd.f32 %v3797_v57, %v3783_v19 }
 0x23a   : > { %v2427_v8 = vpop.f32.mrf.mxu1 }
 0x23b   : > { %v2536_v54 = vadd.f32 %v2535_v9, %v2427_v8 }
 0x256   : > { %v3786_v21 = vpop.f32.mrf.mxu1 }
 0x257   : > { %v2551_v45 = vadd.f32 %v3800_v43, %v3786_v21  ;;  %v3042_v21 = vld [vmem:[%s5423_s11 + $0x50] sm:$0xff]  ;;  %v3040_v43 = vld [vmem:[%s5423_s11 + $0x40] sm:$0xff] }
 0x258   : > { %v2437_v44 = vpop.f32.mrf.mxu1 }
 0x259   : > { %v2546_v37 = vadd.f32 %v2545_v27, %v2437_v44  ;;  %v3041_v44 = vld [vmem:[%s5423_s11 + $0x48] sm:$0xff]  ;;  %v3038_v27 = vld [vmem:[%s5423_s11 + $0x30] sm:$0xff] }
 0x25a   : > { %v3789_v5 = vpop.f32.mrf.mxu1 }
 0x25b   : > { %v2561_v17 = vadd.f32 %v3803_v23, %v3789_v5  ;;  %v3036_v23 = vld [vmem:[%s5423_s11 + $0x20] sm:$0xff] }
 0x25c   : > { %v2447_v13 = vpop.f32.mrf.mxu1 }
 0x25d   : > { %v2556_v35 = vadd.f32 %v2555_v14, %v2447_v13  ;;  %v3039_v13 = vld [vmem:[%s5423_s11 + $0x38] sm:$0xff]  ;;  %v2904_v14 = vld [vmem:[%s5421_s9] sm:$0xff] }
 0x26f   : > { %v3792_v4 = vpop.f32.mrf.mxu1 }
 0x270   : > { %v2571_v10 = vadd.f32 %v3806_v33, %v3792_v4  ;;  %v3037_v4 = vld [vmem:[%s5423_s11 + $0x28] sm:$0xff] }
 0x271   : > { %v2457_v60 = vpop.f32.mrf.mxu1 }
 0x272   : > { %v2566_v0 = vadd.f32 %v2565_v38, %v2457_v60  ;;  %v2907_v60 = vld [vmem:[%s5421_s9 + $0x18] sm:$0xff] }
 0x273   : > { %v3813_v58 = vpop.f32.mrf.mxu1  ;;  %3891 = vmatprep.subr.mxu1 %v2907_v60 }
 0x274   : > { %v2706_v15 = vadd.f32 %v3813_v58, %v2541_v3  ;;  %v3035_v3 = vld [vmem:[%s5423_s11 + $0x18] sm:$0xff]  ;;  %v2906_v58 = vld [vmem:[%s5421_s9 + $0x10] sm:$0xff]  ;;  %3892 = vmatpush3.msra.mxu1 %v2907_v60 }
 0x275   : > { %v2666_v46 = vpop.f32.mrf.mxu1  ;;  %3893 = vmatprep.subr.mxu1 %v2906_v58 }
 0x276   : > { %v2721_v28 = vadd.f32 %v3619_v41, %v2706_v15  ;;  %v2705_v53 = vadd.f32 %v2666_v46, %v2536_v54  ;;  %v2905_v54 = vld [vmem:[%s5421_s9 + $0x8] sm:$0xff]  ;;  %3894 = vmatpush3.msra.mxu1 %v2906_v58  ;;  %v3032_v46 = vld [vmem:[%s5423_s11] sm:$0xff] }
 0x277   : > { %v3816_v62 = vpop.f32.mrf.mxu1  ;;  %v3033_v15 = vld [vmem:[%s5423_s11 + $0x8] sm:$0xff]  ;;  %3895 = vmatprep.subr.mxu1 %v2905_v54 }
 0x278   : > { %v2720_v49 = vadd.f32 %v3619_v41, %v2705_v53  ;;  %v2708_v39 = vadd.f32 %v3816_v62, %v2551_v45  ;;  %vm2729_vm2 = vcmp.gt.f32.partialorder %v2721_v28, 0.0  ;;  %v2737_v31 = vmul.f32 0.01, %v2721_v28  ;;  %3896 = vmatpush3.msra.mxu1 %v2905_v54  ;;  %v3620_v45 = vld [vmem:[%s5420_s8] ss:$0 sm:$0xff] }
 0x279   : > { %v2676_v59 = vpop.f32.mrf.mxu1  ;;  %3897 = vmatprep.subr.mxu1 %v2904_v14 }
 0x27a   : > { %v2723_v52 = vadd.f32 %v3619_v41, %v2708_v39  ;;  %v2707_v40 = vadd.f32 %v2676_v59, %v2546_v37  ;;  %vm2728_vm7 = vcmp.gt.f32.partialorder %v2720_v49, 0.0  ;;  %v2736_v18 = vmul.f32 0.01, %v2720_v49  ;;  %3898 = vmatpush3.msra.mxu1 %v2904_v14 }
 0x27b   : > { %v3819_v20 = vpop.f32.mrf.mxu1  ;;  %v2745_v16 = vsel %vm2729_vm2, %v2721_v28, %v2737_v31 }
 0x27c   : > { %v2722_v25 = vadd.f32 %v3619_v41, %v2707_v40  ;;  %v2710_v7 = vadd.f32 %v3819_v20, %v2561_v17  ;;  %v2744_v42 = vsel %vm2728_vm7, %v2720_v49, %v2736_v18  ;;  %vm2731_vm8 = vcmp.gt.f32.partialorder %v2723_v52, 0.0 }
 0x27d   : > { %v2686_v61 = vpop.f32.mrf.mxu1  ;;  %3855 = vmatprep.mubr.f32.mxu0 %v2744_v42  ;;  %v2739_v51 = vmul.f32 0.01, %v2723_v52  ;;  %vm3224_vm7 = vcmask 261120  }
 0x27e   : > { %v2725_v55 = vadd.f32 %v3619_v41, %v2710_v7  ;;  %v2709_v26 = vadd.f32 %v2686_v61, %v2556_v35  ;;  %3856 = vmatmul.mubr.f32.vlgmr.msra.gmra.mxu0 %v2745_v16  ;;  %vm2730_vm13 = vcmp.gt.f32.partialorder %v2722_v25, 0.0  ;;  %v2738_v12 = vmul.f32 0.01, %v2722_v25 }
 0x27f   : > { %v3822_v56 = vpop.f32.mrf.mxu1  ;;  %3912 = vmatpush3.msra.mxu0 %v5166_v63  ;;  %v2747_v22 = vsel %vm2731_vm8, %v2723_v52, %v2739_v51  ;;  %v3044_v63 = vld [vmem:[%s5423_s11 + $0x60] sm:$0xff] }
 0x280   : > { %v2724_v36 = vadd.f32 %v3619_v41, %v2709_v26  ;;  %v2712_v2 = vadd.f32 %v3822_v56, %v2571_v10  ;;  %v2746_v24 = vsel %vm2730_vm13, %v2722_v25, %v2738_v12  ;;  %3913 = vmatprep.subr.mxu0 %v3046_v34  ;;  %vm2733_vm3 = vcmp.gt.f32.partialorder %v2725_v55, 0.0 }
 0x281   : > { %v2696_v11 = vpop.f32.mrf.mxu1  ;;  %3858 = vmatprep.mubr.f32.mxu0 %v2746_v24  ;;  %v2741_v32 = vmul.f32 0.01, %v2725_v55  ;;  %3914 = vmatpush3.msra.mxu0 %v3046_v34  ;;  %v3268_v24 = vld [vmem:[%s5425_s13 + $0x18] sm:$0xff] }
 0x282   : > { %v2727_v6 = vadd.f32 %v3619_v41, %v2712_v2  ;;  %v2711_v47 = vadd.f32 %v2696_v11, %v2566_v0  ;;  %3859 = vmatmul.mubr.f32.gmra.mxu0 %v2747_v22  ;;  %vm2732_vm14 = vcmp.gt.f32.partialorder %v2724_v36, 0.0  ;;  %v2740_v30 = vmul.f32 0.01, %v2724_v36  ;;  %3915 = vmatprep.subr.mxu0 %v3045_v50  ;;  %v3267_v11 = vld [vmem:[%s5425_s13 + $0x10] sm:$0xff]  ;;  %v3266_v22 = vld [vmem:[%s5425_s13 + $0x8] sm:$0xff] }
 0x283   : > { %3916 = vmatpush3.msra.mxu0 %v3045_v50  ;;  %v2749_v19 = vsel %vm2733_vm3, %v2725_v55, %v2741_v32  ;;  %3955 = vmatprep.subr.mxu1 %v3268_v24  ;;  %v3265_v32 = vld [vmem:[%s5425_s13] sm:$0xff] }
 0x284   : > { %v2726_v48 = vadd.f32 %v3619_v41, %v2711_v47  ;;  %v2748_v29 = vsel %vm2732_vm14, %v2724_v36, %v2740_v30  ;;  %3917 = vmatprep.subr.mxu0 %v3044_v63  ;;  %v2743_v8 = vmul.f32 0.01, %v2727_v6  ;;  %vm2735_vm10 = vcmp.gt.f32.partialorder %v2727_v6, 0.0  ;;  %v3034_v41 = vld [vmem:[%s5423_s11 + $0x10] sm:$0xff] }
 0x285   : > { %3861 = vmatprep.mubr.f32.mxu0 %v2748_v29  ;;  %3918 = vmatpush3.msra.mxu0 %v3044_v63  ;;  %v3622_v63 = vld [vmem:[%s5424_s12] ss:$0 sm:$0xff] }
 0x286   : > { %3862 = vmatmul.mubr.f32.gmra.mxu0 %v2749_v19  ;;  %vm2734_vm4 = vcmp.gt.f32.partialorder %v2726_v48, 0.0  ;;  %v2742_v57 = vmul.f32 0.01, %v2726_v48  ;;  %3919 = vmatprep.subr.mxu0 %v3043_v1  ;;  %v2751_v5 = vsel %vm2735_vm10, %v2727_v6, %v2743_v8 }
 0x287   : > { %3920 = vmatpush3.msra.mxu0 %v3043_v1 }
 0x288   : > { %v2750_v9 = vsel %vm2734_vm4, %v2726_v48, %v2742_v57  ;;  %3921 = vmatprep.subr.mxu0 %v3042_v21 }
 0x289   : > { %3864 = vmatprep.mubr.f32.mxu0 %v2750_v9  ;;  %3922 = vmatpush3.msra.mxu0 %v3042_v21 }
 0x28a   : > { %3865 = vmatmul.mubr.f32.gmra.mxu0 %v2751_v5  ;;  %3923 = vmatprep.subr.mxu0 %v3041_v44 }
 0x28b   : > { %3924 = vmatpush3.msra.mxu0 %v3041_v44 }
 0x28c   : > { %3925 = vmatprep.subr.mxu0 %v3040_v43 }
 0x28d   : > { %3926 = vmatpush3.msra.mxu0 %v3040_v43 }
 0x28e   : > { %3927 = vmatprep.subr.mxu0 %v3039_v13 }
 0x28f   : > { %3928 = vmatpush3.msra.mxu0 %v3039_v13 }
 0x290   : > { %3929 = vmatprep.subr.mxu0 %v3038_v27 }
 0x291   : > { %3930 = vmatpush3.msra.mxu0 %v3038_v27 }
 0x292   : > { %3931 = vmatprep.subr.mxu0 %v3037_v4 }
 0x293   : > { %3932 = vmatpush3.msra.mxu0 %v3037_v4 }
 0x294   : > { %3933 = vmatprep.subr.mxu0 %v3036_v23 }
 0x295   : > { %3934 = vmatpush3.msra.mxu0 %v3036_v23 }
 0x296   : > { %3935 = vmatprep.subr.mxu0 %v3035_v3 }
 0x297   : > { %3936 = vmatpush3.msra.mxu0 %v3035_v3 }
 0x298   : > { %3937 = vmatprep.subr.mxu0 %v3034_v41 }
 0x299   : > { %3938 = vmatpush3.msra.mxu0 %v3034_v41 }
 0x29a   : > { %3939 = vmatprep.subr.mxu0 %v3033_v15 }
 0x29b   : > { %3940 = vmatpush3.msra.mxu0 %v3033_v15 }
 0x29c   : > { %3941 = vmatprep.subr.mxu0 %v3032_v46 }
 0x29d   : > { %3942 = vmatpush3.msra.mxu0 %v3032_v46 }
 0x33e   : > { %v3857_v28 = vpop.f32.mrf.mxu0 }
 0x33f   : > { %v2847_v53 = vadd.f32 %v3857_v28, %v3620_v45 }
 0x340   : > { %v2841_v62 = vpop.f32.mrf.mxu0 }
 0x341   : > { %v2842_v37 = vadd.f32 %v3620_v45, %v2841_v62  ;;  %v2889_v49 = vmul.f32 0.01, %v2847_v53  ;;  %vm2881_vm11 = vcmp.gt.f32.partialorder %v2847_v53, 0.0 }
 0x342   : > { %v3860_v39 = vpop.f32.mrf.mxu0 }
 0x343   : > { %v2888_v17 = vmul.f32 0.01, %v2842_v37  ;;  %v2857_v33 = vadd.f32 %v3860_v39, %v3620_v45  ;;  %vm2880_vm9 = vcmp.gt.f32.partialorder %v2842_v37, 0.0  ;;  %v2897_v40 = vsel %vm2881_vm11, %v2847_v53, %v2889_v49 }
 0x344   : > { %v2851_v31 = vpop.f32.mrf.mxu0 }
 0x345   : > { %v2852_v59 = vadd.f32 %v3620_v45, %v2851_v31  ;;  %v2896_v52 = vsel %vm2880_vm9, %v2842_v37, %v2888_v17  ;;  %v2891_v18 = vmul.f32 0.01, %v2857_v33  ;;  %vm2883_vm15 = vcmp.gt.f32.partialorder %v2857_v33, 0.0 }
 0x346   : > { %v3863_v20 = vpop.f32.mrf.mxu0  ;;  %3899 = vmatprep.mubr.f32.mxu1 %v2896_v52  ;;  %3943 = vmatprep.mubr.f32.mxu0 %v2896_v52 }
 0x347   : > { %v2890_v35 = vmul.f32 0.01, %v2852_v59  ;;  %v2867_v25 = vadd.f32 %v3863_v20, %v3620_v45  ;;  %3900 = vmatmul.mubr.f32.vlgmr.msra.gmra.mxu1 %v2897_v40  ;;  %3944 = vmatmul.mubr.f32.vlgmr.msra.gmra.mxu0 %v2897_v40  ;;  %vm2882_vm5 = vcmp.gt.f32.partialorder %v2852_v59, 0.0  ;;  %v2899_v16 = vsel %vm2883_vm15, %v2857_v33, %v2891_v18 }
 0x348   : > { %v2861_v7 = vpop.f32.mrf.mxu0  ;;  %3956 = vmatpush3.msra.mxu1 %v3268_v24 }
 0x349   : > { %v2862_v42 = vadd.f32 %v3620_v45, %v2861_v7  ;;  %v2898_v10 = vsel %vm2882_vm5, %v2852_v59, %v2890_v35  ;;  %v2893_v38 = vmul.f32 0.01, %v2867_v25  ;;  %vm2885_vm6 = vcmp.gt.f32.partialorder %v2867_v25, 0.0  ;;  %3957 = vmatprep.subr.mxu1 %v3267_v11  ;;  %v5320_v59 = vld [vmem:[%s5422_s10] ss:$0 sm:$0xff] }
 0x34a   : > { %v3866_v61 = vpop.f32.mrf.mxu0  ;;  %3902 = vmatprep.mubr.f32.mxu1 %v2898_v10  ;;  %3946 = vmatprep.mubr.f32.mxu0 %v2898_v10  ;;  %v3201_v10 = vld [vmem:[%s5328_s20 + $0x8] sm:$0xff] }
 0x34b   : > { %v2892_v51 = vmul.f32 0.01, %v2862_v42  ;;  %v2877_v34 = vadd.f32 %v3866_v61, %v3620_v45  ;;  %3903 = vmatmul.mubr.f32.gmra.mxu1 %v2899_v16  ;;  %3947 = vmatmul.mubr.f32.gmra.mxu0 %v2899_v16  ;;  %vm2884_vm12 = vcmp.gt.f32.partialorder %v2862_v42, 0.0  ;;  %v2901_v50 = vsel %vm2885_vm6, %v2867_v25, %v2893_v38 }
 0x34c   : > { %v2871_v55 = vpop.f32.mrf.mxu0  ;;  %3958 = vmatpush3.msra.mxu1 %v3267_v11 }
 0x34d   : > { %v2872_v26 = vadd.f32 %v3620_v45, %v2871_v55  ;;  %v2900_v12 = vsel %vm2884_vm12, %v2862_v42, %v2892_v51  ;;  %v2895_v56 = vmul.f32 0.01, %v2877_v34  ;;  %vm2887_vm2 = vcmp.gt.f32.partialorder %v2877_v34, 0.0  ;;  %3959 = vmatprep.subr.mxu1 %v3266_v22  ;;  %v3200_v51 = vld [vmem:[%s5328_s20] sm:$0xff] }
 0x34e   : > { %3905 = vmatprep.mubr.f32.mxu1 %v2900_v12  ;;  %3949 = vmatprep.mubr.f32.mxu0 %v2900_v12 }
 0x34f   : > { %v2894_v0 = vmul.f32 0.01, %v2872_v26  ;;  %3906 = vmatmul.mubr.f32.gmra.mxu1 %v2901_v50  ;;  %3950 = vmatmul.mubr.f32.gmra.mxu0 %v2901_v50  ;;  %vm2886_vm0 = vcmp.gt.f32.partialorder %v2872_v26, 0.0  ;;  %v2903_v2 = vsel %vm2887_vm2, %v2877_v34, %v2895_v56 }
 0x350   : > { %3960 = vmatpush3.msra.mxu1 %v3266_v22 }
 0x351   : > { %v2902_v36 = vsel %vm2886_vm0, %v2872_v26, %v2894_v0  ;;  %3961 = vmatprep.subr.mxu1 %v3265_v32 }
 0x352   : > { %3908 = vmatprep.mubr.f32.mxu1 %v2902_v36  ;;  %3952 = vmatprep.mubr.f32.mxu0 %v2902_v36 }
 0x353   : > { %3909 = vmatmul.mubr.f32.gmra.mxu1 %v2903_v2  ;;  %3953 = vmatmul.mubr.f32.gmra.mxu0 %v2903_v2 }
 0x354   : > { %3962 = vmatpush3.msra.mxu1 %v3265_v32 }
 0x407   : > { %v3945_v6 = vpop.f32.mrf.mxu0  ;;  %v3901_v30 = vpop.f32.mrf.mxu1 }
 0x408   : > { %v5284_v47 = vadd.f32 %v3945_v6, %v3622_v63  ;;  %v2999_v7 = vadd.f32 %v3901_v30, %v5320_v59 }
 0x409   : > { %v3121_v1 = vpop.f32.mrf.mxu0  ;;  %v2993_v57 = vpop.f32.mrf.mxu1 }
 0x40a   : > { %v3161_v48 = vmax.f32 %v5284_v47, -6.0  ;;  %v5287_v29 = vadd.f32 %v3622_v63, %v3121_v1  ;;  %v2994_v38 = vadd.f32 %v5320_v59, %v2993_v57  ;;  %v3234_v26 = vmul.f32 %v2999_v7, %v2999_v7 }
 0x40b   : > { %v3948_v19 = vpop.f32.mrf.mxu0  ;;  %v3904_v60 = vpop.f32.mrf.mxu1 }
 0x40c   : > { %v3169_v8 = vmul.f32 0.5, %v3161_v48  ;;  %v3160_v21 = vmax.f32 %v5287_v29, -6.0  ;;  %v5292_v44 = vadd.f32 %v3948_v19, %v3622_v63  ;;  %v3233_v0 = vmul.f32 %v2994_v38, %v2994_v38  ;;  %v3207_v29 = vld [vmem:[%s5328_s20 + $0x38] sm:$0xff] }
 0x40d   : > { %v3131_v9 = vpop.f32.mrf.mxu0  ;;  %v3003_v37 = vpop.f32.mrf.mxu1  ;;  %v3009_v36 = vadd.f32 %v3904_v60, %v5320_v59 }
 0x40e   : > { %v3178_v5 = vmul.f32 1.442695, %v3169_v8  ;;  %v3168_v43 = vmul.f32 0.5, %v3160_v21  ;;  %v3163_v13 = vmax.f32 %v5292_v44, -6.0  ;;  %v5297_v27 = vadd.f32 %v3622_v63, %v3131_v9  ;;  %v3202_v8 = vld [vmem:[%s5328_s20 + $0x10] sm:$0xff] }
 0x40f   : > { %v3951_v4 = vpop.f32.mrf.mxu0  ;;  %v3907_v35 = vpop.f32.mrf.mxu1  ;;  %v3004_v2 = vadd.f32 %v5320_v59, %v3003_v37 }
 0x410   : > { %4055 = vpow2.f32 %v3178_v5  ;;  %v3176_v23 = vmul.f32 1.442695, %v3168_v43  ;;  %v3171_v3 = vmul.f32 0.5, %v3163_v13  ;;  %v3162_v58 = vmax.f32 %v5297_v27, -6.0 }
 0x411   : > { %v5302_v41 = vadd.f32 %v3951_v4, %v3622_v63  ;;  %v3141_v54 = vpop.f32.mrf.mxu0  ;;  %v3013_v34 = vpop.f32.mrf.mxu1  ;;  %v3019_v57 = vadd.f32 %v3907_v35, %v5320_v59  ;;  %v3236_v43 = vmul.f32 %v3009_v36, %v3009_v36 }
 0x412   : > { %4057 = vpow2.f32 %v3176_v23  ;;  %v5304_v15 = vadd.f32 %v3622_v63, %v3141_v54  ;;  %v3182_v14 = vmul.f32 1.442695, %v3171_v3  ;;  %v3170_v46 = vmul.f32 0.5, %v3162_v58 }
 0x413   : > { %v3165_v45 = vmax.f32 %v5302_v41, -6.0  ;;  %v3954_v28 = vpop.f32.mrf.mxu0  ;;  %v3910_v6 = vpop.f32.mrf.mxu1  ;;  %v3014_v9 = vadd.f32 %v5320_v59, %v3013_v34  ;;  %v3235_v54 = vmul.f32 %v3004_v2, %v3004_v2 }
 0x414   : > { %v3164_v53 = vmax.f32 %v5304_v15, -6.0  ;;  %v5310_v62 = vadd.f32 %v3954_v28, %v3622_v63  ;;  %4059 = vpow2.f32 %v3182_v14  ;;  %v3180_v49 = vmul.f32 1.442695, %v3170_v46 }
 0x415   : > { %v3173_v39 = vmul.f32 0.5, %v3165_v45  ;;  %v3151_v17 = vpop.f32.mrf.mxu0  ;;  %v3029_v14 = vadd.f32 %v3910_v6, %v5320_v59  ;;  %v3023_v35 = vpop.f32.mrf.mxu1 }
 0x416   : > { %v3172_v33 = vmul.f32 0.5, %v3164_v53  ;;  %v3167_v31 = vmax.f32 %v5310_v62, -6.0  ;;  %4061 = vpow2.f32 %v3180_v49  ;;  %v5322_v40 = vadd.f32 %v3622_v63, %v3151_v17  ;;  %v3203_v63 = vld [vmem:[%s5328_s20 + $0x18] sm:$0xff]  ;;  %v3204_v17 = vld [vmem:[%s5328_s20 + $0x20] sm:$0xff] }
 0x417   : > { %v3186_v52 = vmul.f32 1.442695, %v3173_v39  ;;  %v3205_v39 = vld [vmem:[%s5328_s20 + $0x28] sm:$0xff] }
 0x418   : > { %v3184_v18 = vmul.f32 1.442695, %v3172_v33  ;;  %v3175_v20 = vmul.f32 0.5, %v3167_v31  ;;  %v3166_v25 = vmax.f32 %v5322_v40, -6.0 }
 0x419   : > { %4063 = vpow2.f32 %v3186_v52 }
 0x41a   : > { %4065 = vpow2.f32 %v3184_v18  ;;  %v3190_v42 = vmul.f32 1.442695, %v3175_v20  ;;  %v3174_v61 = vmul.f32 0.5, %v3166_v25  ;;  %v3238_v18 = vmul.f32 %v3019_v57, %v3019_v57 }
 0x41b   : > { %v3237_v20 = vmul.f32 %v3014_v9, %v3014_v9 }
 0x41c   : > { %4067 = vpow2.f32 %v3190_v42  ;;  %v3188_v55 = vmul.f32 1.442695, %v3174_v61 }
 0x41d   : > { %v4056_v16 = vpop.eup %4055 }
 0x41e   : > { %v3193_v12 = vmul.f32 %v4056_v16, %v4056_v16  ;;  %v3209_v56 = vmul.f32 %v4056_v16, %v3201_v10  ;;  %4069 = vpow2.f32 %v3188_v55 }
 0x41f   : > { %v4058_v50 = vpop.eup %4057 }
 0x420   : > { %v3217_v24 = vadd.f32 %v3209_v56, %v2999_v7  ;;  %v3242_v11 = vadd.f32 %v3234_v26, %v3193_v12  ;;  %v3192_v22 = vmul.f32 %v4058_v50, %v4058_v50  ;;  %v3208_v32 = vmul.f32 %v4058_v50, %v3200_v51 }
 0x421   : > { %v4060_v30 = vpop.eup %4059  ;;  %v3024_v12 = vadd.f32 %v5320_v59, %v3023_v35 }
 0x422   : > { %3226 = vst.msk [vmem:[%s5343_s24 + $0x8] sm:$0xff] %vm3224_vm7, %v3217_v24  ;;  %v3216_v1 = vadd.f32 %v3208_v32, %v2994_v38  ;;  %v3241_v19 = vadd.f32 %v3233_v0, %v3192_v22  ;;  %v3624_v5 = vadd.f32 -1.0, %v3242_v11  ;;  %v3195_v4 = vmul.f32 %v4060_v30, %v4060_v30 }
 0x423   : > { %v3211_v23 = vmul.f32 %v4060_v30, %v3203_v63  ;;  %v4062_v60 = vpop.eup %4061 }
 0x424   : > { %3225 = vst.msk [vmem:[%s5343_s24] sm:$0xff] %vm3224_vm7, %v3216_v1  ;;  %v3623_v3 = vadd.f32 -1.0, %v3241_v19  ;;  %v3244_v28 = vadd.f32 %v3236_v43, %v3195_v4  ;;  %v3194_v37 = vmul.f32 %v4062_v60, %v4062_v60  ;;  %v3210_v49 = vmul.f32 %v4062_v60, %v3202_v8 }
 0x425   : > { %v3219_v46 = vadd.f32 %v3211_v23, %v3009_v36  ;;  %v3258_v42 = vsub.f32 %v3624_v5, %v3161_v48  ;;  %v3240_v48 = vmul.f32 %v3029_v14, %v3029_v14  ;;  %v3239_v1 = vmul.f32 %v3024_v12, %v3024_v12 }
 0x426   : > { %v4064_v33 = vpop.eup %4063  ;;  %v3257_v52 = vsub.f32 %v3623_v3, %v3160_v21  ;;  %v3218_v10 = vadd.f32 %v3210_v49, %v3004_v2  ;;  %v3243_v38 = vadd.f32 %v3235_v54, %v3194_v37  ;;  %v3626_v16 = vadd.f32 -1.0, %v3244_v28  ;;  %v3206_v2 = vld [vmem:[%s5328_s20 + $0x30] sm:$0xff] }
 0x427   : > { %v4066_v7 = vpop.eup %4065  ;;  %3228 = vst.msk [vmem:[%s5343_s24 + $0x18] sm:$0xff] %vm3224_vm7, %v3219_v46  ;;  %v3197_v61 = vmul.f32 %v4064_v33, %v4064_v33  ;;  %v3213_v51 = vmul.f32 %v4064_v33, %v3205_v39 }
 0x428   : > { %v3196_v34 = vmul.f32 %v4066_v7, %v4066_v7  ;;  %v3212_v55 = vmul.f32 %v4066_v7, %v3204_v17  ;;  %3963 = vmatprep.mubr.msk.f32.mxu1 %vm3224_vm7, %v3257_v52  ;;  %3227 = vst.msk [vmem:[%s5343_s24 + $0x10] sm:$0xff] %vm3224_vm7, %v3218_v10  ;;  %v3625_v26 = vadd.f32 -1.0, %v3243_v38  ;;  %v3260_v32 = vsub.f32 %v3626_v16, %v3163_v13 }
 0x429   : > { %v4068_v21 = vpop.eup %4067  ;;  %v3246_v47 = vadd.f32 %v3238_v18, %v3197_v61  ;;  %3964 = vmatmul.mubr.msk.f32.vlgmr.msra.gmra.mxu1 %vm3224_vm7, %v3258_v42  ;;  %v3221_v56 = vadd.f32 %v3213_v51, %v3019_v57 }
 0x42a   : > { %v3220_v50 = vadd.f32 %v3212_v55, %v3014_v9  ;;  %v3245_v0 = vadd.f32 %v3237_v20, %v3196_v34  ;;  %v3199_v36 = vmul.f32 %v4068_v21, %v4068_v21  ;;  %v3259_v24 = vsub.f32 %v3625_v26, %v3162_v58 }
 0x42b   : > { %v3215_v11 = vmul.f32 %v4068_v21, %v3207_v29  ;;  %v4070_v22 = vpop.eup %4069  ;;  %3230 = vst.msk [vmem:[%s5343_s24 + $0x28] sm:$0xff] %vm3224_vm7, %v3221_v56  ;;  %v3628_v63 = vadd.f32 -1.0, %v3246_v47 }
 0x42c   : > { %3229 = vst.msk [vmem:[%s5343_s24 + $0x20] sm:$0xff] %vm3224_vm7, %v3220_v50  ;;  %v3627_v59 = vadd.f32 -1.0, %v3245_v0  ;;  %v3248_v6 = vadd.f32 %v3240_v48, %v3199_v36  ;;  %v3198_v19 = vmul.f32 %v4070_v22, %v4070_v22  ;;  %v3214_v8 = vmul.f32 %v4070_v22, %v3206_v2  ;;  %3966 = vmatprep.mubr.msk.f32.mxu1 %vm3224_vm7, %v3259_v24 }
 0x42d   : > { %v3223_v30 = vadd.f32 %v3215_v11, %v3029_v14  ;;  %3967 = vmatmul.mubr.msk.f32.gmra.mxu1 %vm3224_vm7, %v3260_v32  ;;  %v3262_v58 = vsub.f32 %v3628_v63, %v3165_v45 }
 0x42e   : > { %v3261_v27 = vsub.f32 %v3627_v59, %v3164_v53  ;;  %v3222_v44 = vadd.f32 %v3214_v8, %v3024_v12  ;;  %v3247_v13 = vadd.f32 %v3239_v1, %v3198_v19  ;;  %v3630_v57 = vadd.f32 -1.0, %v3248_v6 }
 0x42f   : > { %3232 = vst.msk [vmem:[%s5343_s24 + $0x38] sm:$0xff] %vm3224_vm7, %v3223_v30 }
 0x430   : > { %3969 = vmatprep.mubr.msk.f32.mxu1 %vm3224_vm7, %v3261_v27  ;;  %3231 = vst.msk [vmem:[%s5343_s24 + $0x30] sm:$0xff] %vm3224_vm7, %v3222_v44  ;;  %v3629_v9 = vadd.f32 -1.0, %v3247_v13  ;;  %v3264_v53 = vsub.f32 %v3630_v57, %v3167_v31 }
 0x431   : > { %3970 = vmatmul.mubr.msk.f32.gmra.mxu1 %vm3224_vm7, %v3262_v58 }
 0x432   : > { %v3263_v15 = vsub.f32 %v3629_v9, %v3166_v25 }
 0x434   : > { %3972 = vmatprep.mubr.msk.f32.mxu1 %vm3224_vm7, %v3263_v15 }
 0x435   : > { %3973 = vmatmul.mubr.msk.f32.gmra.mxu1 %vm3224_vm7, %v3264_v53 }
 0x4e9   : > { %v3965_v41 = vpop.f32.mrf.mxu1 }
 0x4ea   : > { %3399 = vst.msk [vmem:[%s532_s27 + $0x8] sm:$0xff] %vm543_vm1, %v3965_v41 }
 0x4eb   : > { %v3359_v45 = vpop.f32.mrf.mxu1 }
 0x4ec   : > { %3398 = vst.msk [vmem:[%s532_s27] sm:$0xff] %vm543_vm1, %v3359_v45 }
 0x4ed   : > { %v3968_v5 = vpop.f32.mrf.mxu1 }
 0x4ee   : > { %3401 = vst.msk [vmem:[%s532_s27 + $0x18] sm:$0xff] %vm543_vm1, %v3968_v5 }
 0x4ef   : > { %v3369_v40 = vpop.f32.mrf.mxu1 }
 0x4f0   : > { %3400 = vst.msk [vmem:[%s532_s27 + $0x10] sm:$0xff] %vm543_vm1, %v3369_v40 }
 0x4f1   : > { %v3971_v62 = vpop.f32.mrf.mxu1 }
 0x4f2   : > { %3403 = vst.msk [vmem:[%s532_s27 + $0x28] sm:$0xff] %vm543_vm1, %v3971_v62 }
 0x4f3   : > { %v3379_v31 = vpop.f32.mrf.mxu1 }
 0x4f4   : > { %3402 = vst.msk [vmem:[%s532_s27 + $0x20] sm:$0xff] %vm543_vm1, %v3379_v31 }
 0x4f5   : > { %v3974_v25 = vpop.f32.mrf.mxu1 }
 0x4f6   : > { %3405 = vst.msk [vmem:[%s532_s27 + $0x38] sm:$0xff] %vm543_vm1, %v3974_v25 }
 0x4f7   : > { %v3389_v43 = vpop.f32.mrf.mxu1 }
 0x4f8   : > { %3404 = vst.msk [vmem:[%s532_s27 + $0x30] sm:$0xff] %vm543_vm1, %v3389_v43 }
 0x4f9 PF: > { %s26_s18 = sadd.s32 1, %s4077_s18  }
 0x4fa   : > { %p23_p4 = scmp.ge.s32.totalorder %s26_s18, 4  }
 0x4fc   :  { %25 = sbr.rel (!%p23_p4) target bundleno = 1 (0x1), region = 121 }

</bundles_post_ra>
